<compile_context>
chip_gen: v5e
topology: v5e:2x2
jax: 0.10.0
libtpu: 0.0.40
codegen_flags: <defaults>
</compile_context>

<pallas_src>
import numpy as np
import jax
import jax.numpy as jnp
from jax import lax
from jax.experimental import pallas as pl
from jax.experimental.pallas import tpu as pltpu

ALPHA = 1e-8          # MinibatchStdDev epsilon
NEG_SLOPE = 0.2       # LeakyReLU slope
MAX_NORM = 1.0        # Embedding max_norm
RENORM_EPS = 1e-7     # torch.embedding_renorm_ epsilon
GROUP_SIZE = 4        # MinibatchStdDev default group size


def _leaky_relu(y):
    return jnp.where(y >= 0, y, NEG_SLOPE * y)


def prepare_params(w1, b1, w2, b2, w3, b3, emb_w, use_eql=False):
    """One-time weight re-layout for the NCHW-flat kernel (col = ci*16 + h*4 + w).

    Called once at weight-load time, outside the hot path.
    """
    w1 = jnp.asarray(w1, jnp.float32)
    w2 = jnp.asarray(w2, jnp.float32)
    w3 = jnp.asarray(w3, jnp.float32)
    b1 = jnp.asarray(b1, jnp.float32)
    b2 = jnp.asarray(b2, jnp.float32)
    b3 = jnp.asarray(b3, jnp.float32)
    emb_w = jnp.asarray(emb_w, jnp.float32)

    C = w1.shape[0]                 # conv_1: (C, C+1, 3, 3)
    Cout = w2.shape[0]              # conv_2: (Cout, C, 4, 4)
    assert w1.shape == (C, C + 1, 3, 3)
    assert w2.shape[1:] == (C, 4, 4)
    assert w3.shape == (1, Cout, 1, 1)

    if use_eql:                     # EqualizedConv2d: weight * sqrt(2 / fan_in)
        w1 = w1 * np.sqrt(2.0 / (3 * 3 * (C + 1)))
        w2 = w2 * np.sqrt(2.0 / (4 * 4 * C))
        w3 = w3 * np.sqrt(2.0 / (1 * 1 * Cout))

    w1x = w1[:, :C, :, :]           # (C, C, 3, 3)  x-channel part of conv_1
    w1s = w1[:, C, :, :]            # (C, 3, 3)     std-channel slice of conv_1

    # 3x3 / pad=1 connectivity on the flattened 4x4 map (host-side constant).
    conn = np.zeros((16, 16, 3, 3), np.float32)      # [s_out, s_in, kh, kw]
    for h in range(4):
        for w in range(4):
            for kh in range(3):
                for kw in range(3):
                    hi, wi = h + kh - 1, w + kw - 1
                    if 0 <= hi < 4 and 0 <= wi < 4:
                        conn[h * 4 + w, hi * 4 + wi, kh, kw] = 1.0
    conn = jnp.asarray(conn)

    # NCHW-flat layout: input col = ci*16 + q, output col = co*16 + p.
    W1 = jnp.einsum('pqkl,oikl->iqop', conn, w1x,
                    precision=lax.Precision.HIGHEST).reshape(16 * C, 16 * C)
    T1 = jnp.einsum('pkl,okl->op', jnp.sum(conn, axis=1), w1s,
                    precision=lax.Precision.HIGHEST).reshape(1, 16 * C)
    b1_row = jnp.repeat(b1, 16).reshape(1, 16 * C)             # bias[co] at co*16+p
    R1 = jnp.concatenate([T1, b1_row], axis=0)                 # (2, 16C)

    # conv_2 (4x4 valid on a 4x4 map) == full contraction over (ci, h, w).
    W2 = jnp.transpose(w2, (1, 2, 3, 0)).reshape(16 * C, Cout)

    b2_row = b2.reshape(1, Cout)
    w3_row = w3.reshape(1, Cout)
    b3_row = jnp.concatenate([b3.reshape(1, 1),
                              jnp.zeros((1, Cout - 1), jnp.float32)], axis=1)
    R2 = jnp.concatenate([b2_row, w3_row, b3_row], axis=0)     # (3, Cout)

    return dict(W1=W1, R1=R1, W2=W2, R2=R2, emb=emb_w)


def con_dis_final_block(x, labels, params):
    """x: (B, C, 4, 4) NCHW, labels: (B,) int. Returns (B,) final scores."""
    B, C, H, W = x.shape
    assert (H, W) == (4, 4), "ConDisFinalBlock expects a 4x4 feature map"
    SC = 16 * C
    Cout = params['W2'].shape[1]
    NCLS = params['emb'].shape[0]

    g = GROUP_SIZE if B > GROUP_SIZE else B
    assert B % g == 0
    m = B // g
    half = SC // 2                      # = 8*C -> sublane-aligned row split of W1

    x_flat = x.reshape(B, SC)                          # free: NCHW is contiguous
    lab2d = labels.astype(jnp.int32).reshape(B, 1)     # free metadata reshape

    def kernel(x_ref, lab_ref, w1_hbm, r1_ref, w2_ref, r2_ref, emb_ref,
               o_ref, w1_vmem, sem):
        # Kick off the W1 HBM->VMEM copy first (dominant input bytes) in two
        # contiguous row-halves, so std/embedding work below hides its latency.
        cp0 = pltpu.make_async_copy(w1_hbm.at[:half, :], w1_vmem.at[:half, :],
                                    sem.at[0])
        cp1 = pltpu.make_async_copy(w1_hbm.at[half:, :], w1_vmem.at[half:, :],
                                    sem.at[1])
        cp0.start()
        cp1.start()

        x = x_ref[...]                                         # (B, SC)

        # ---- MinibatchStdDev: group-average matrix from iota, one fused matmul
        row = lax.broadcasted_iota(jnp.int32, (B, B), 0)
        col = lax.broadcasted_iota(jnp.int32, (B, B), 1)
        ga = jnp.where((row % m) == (col % m),
                       jnp.float32(1.0 / g), jnp.float32(0.0))  # (B, B)
        stats = jnp.dot(ga, jnp.concatenate([x, x * x], axis=-1),
                        preferred_element_type=jnp.float32)     # (B, 2*SC)
        mu = stats[:, :SC]
        var = jnp.maximum(stats[:, SC:] - mu * mu, 0.0)
        sd = jnp.sqrt(var + ALPHA)
        sd_col = jnp.mean(sd, axis=-1, keepdims=True)           # (B, 1)

        # ---- label embedding: in-kernel one-hot gather + max_norm=1 renorm ----
        cls = lax.broadcasted_iota(jnp.int32, (B, NCLS), 1)
        onehot = (cls == lab_ref[...]).astype(jnp.float32)      # (B, NCLS)
        emb = jnp.dot(onehot, emb_ref[...],
                      preferred_element_type=jnp.float32)       # (B, Cout)
        nrm = jnp.sqrt(jnp.sum(emb * emb, axis=-1, keepdims=True))
        emb = emb * jnp.where(nrm > MAX_NORM, MAX_NORM / (nrm + RENORM_EPS), 1.0)

        # ---- conv_1 (3x3, pad=1) as dense matmul, consuming W1 half by half ----
        r1 = r1_ref[...]                                        # (2, SC)
        cp0.wait()
        y1 = jnp.dot(x[:, :half], w1_vmem[:half, :],
                     preferred_element_type=jnp.float32)
        cp1.wait()
        y1 = y1 + jnp.dot(x[:, half:], w1_vmem[half:, :],
                          preferred_element_type=jnp.float32)   # (B, SC)
        y1 = _leaky_relu(y1 + sd_col * r1[0:1, :] + r1[1:2, :])

        # ---- conv_2 (4x4 valid, 4x4 input -> 1x1) as full-contraction matmul ----
        y2 = jnp.dot(y1, w2_ref[...], preferred_element_type=jnp.float32)  # (B, Cout)
        r2 = r2_ref[...]                                        # (3, Cout)
        y2 = _leaky_relu(y2 + r2[0:1, :])

        # ---- projection score + conv_3 (1x1 -> 1) + LeakyReLU ----
        proj = jnp.sum(y2 * emb, axis=-1, keepdims=True)        # (B, 1)
        y3 = jnp.sum(y2 * r2[1:2, :], axis=-1, keepdims=True) + r2[2:3, 0:1]
        o_ref[...] = (_leaky_relu(y3) + proj).astype(o_ref.dtype)

    flops = (4 * B * B * SC + 2 * B * SC * SC + 2 * B * SC * Cout
             + 2 * B * NCLS * Cout + 16 * B * SC)
    bytes_accessed = 4 * (B * SC + B + SC * SC + 2 * SC + SC * Cout
                          + 3 * Cout + NCLS * Cout + B)
    cost = pl.CostEstimate(flops=int(flops), transcendentals=int(B * SC + B),
                           bytes_accessed=int(bytes_accessed))

    vmem = pl.BlockSpec(memory_space=pltpu.MemorySpace.VMEM)
    hbm = pl.BlockSpec(memory_space=pl.ANY)      # W1 stays in HBM, DMA'd manually

    out = pl.pallas_call(
        kernel,
        out_shape=jax.ShapeDtypeStruct((B, 1), jnp.float32),
        in_specs=[vmem, vmem, hbm, vmem, vmem, vmem, vmem],
        out_specs=vmem,
        scratch_shapes=[pltpu.VMEM((SC, SC), jnp.float32),
                        pltpu.SemaphoreType.DMA((2,))],
        cost_estimate=cost,
    )(x_flat, lab2d, params['W1'], params['R1'], params['W2'], params['R2'],
      params['emb'])
    return out.reshape(B)


def reference(x, labels, w1, b1, w2, b2, w3, b3, emb_w, use_eql=False):
    """Pure-JAX reference mirroring the PyTorch forward exactly (NCHW)."""
    B, C, H, W = x.shape
    Cout = w2.shape[0]
    if use_eql:
        w1 = w1 * np.sqrt(2.0 / (3 * 3 * (C + 1)))
        w2 = w2 * np.sqrt(2.0 / (4 * 4 * C))
        w3 = w3 * np.sqrt(2.0 / (1 * 1 * Cout))
    # MinibatchStdDev
    g = GROUP_SIZE if B > GROUP_SIZE else B
    m = B // g
    y = x.reshape(g, m, C, H, W)
    y = y - jnp.mean(y, axis=0, keepdims=True)
    y = jnp.sqrt(jnp.mean(y * y, axis=0) + ALPHA)             # (m, C, H, W)
    y = jnp.mean(y, axis=(1, 2, 3), keepdims=True)            # (m, 1, 1, 1)
    y = jnp.tile(y, (g, 1, H, W))                             # (B, 1, H, W)
    y = jnp.concatenate([x, y], axis=1)
    # conv_1 + lrelu
    y = lax.conv_general_dilated(y, w1, (1, 1), ((1, 1), (1, 1)),
                                 dimension_numbers=('NCHW', 'OIHW', 'NCHW'),
                                 precision=lax.Precision.HIGHEST)
    y = _leaky_relu(y + b1[None, :, None, None])
    # conv_2 + lrelu
    y = lax.conv_general_dilated(y, w2, (1, 1), ((0, 0), (0, 0)),
                                 dimension_numbers=('NCHW', 'OIHW', 'NCHW'),
                                 precision=lax.Precision.HIGHEST)
    y = _leaky_relu(y + b2[None, :, None, None])              # (B, Cout, 1, 1)
    # label embedding (max_norm=1) + projection
    rows = emb_w[labels]
    nrm = jnp.sqrt(jnp.sum(rows * rows, axis=-1, keepdims=True))
    rows = rows * jnp.where(nrm > MAX_NORM, MAX_NORM / (nrm + RENORM_EPS), 1.0)
    proj = jnp.sum(y[:, :, 0, 0] * rows, axis=-1)
    # conv_3 + lrelu
    y3 = lax.conv_general_dilated(y, w3, (1, 1), ((0, 0), (0, 0)),
                                  dimension_numbers=('NCHW', 'OIHW', 'NCHW'),
                                  precision=lax.Precision.HIGHEST)
    y3 = _leaky_relu(y3 + b3[None, :, None, None])
    return y3.reshape(-1) + proj


if __name__ == "__main__":
    # ConDisFinalBlock(in_channels=32, out_channels=48, num_classes=10, use_eql=True)
    B, Cin, Cout, num_classes = 8, 32, 48, 10
    use_eql = True

    key = jax.random.PRNGKey(0)
    kx, kl, k1, k2, k3, k4, k5, k6, k7 = jax.random.split(key, 9)
    x      = jax.random.normal(kx, (B, Cin, 4, 4), dtype=jnp.float32)
    labels = jax.random.randint(kl, (B,), 0, num_classes, dtype=jnp.int32)
    w1 = jax.random.normal(k1, (Cin, Cin + 1, 3, 3), dtype=jnp.float32)
    b1 = jax.random.normal(k2, (Cin,), dtype=jnp.float32) * 0.1
    w2 = jax.random.normal(k3, (Cout, Cin, 4, 4), dtype=jnp.float32)
    b2 = jax.random.normal(k4, (Cout,), dtype=jnp.float32) * 0.1
    w3 = jax.random.normal(k5, (1, Cout, 1, 1), dtype=jnp.float32)
    b3 = jax.random.normal(k6, (1,), dtype=jnp.float32) * 0.1
    emb_w = jax.random.normal(k7, (num_classes, Cout), dtype=jnp.float32)

    params = prepare_params(w1, b1, w2, b2, w3, b3, emb_w, use_eql=use_eql)
    fwd = jax.jit(con_dis_final_block)
    out = jax.block_until_ready(fwd(x, labels, params))

    ref = reference(x, labels, w1, b1, w2, b2, w3, b3, emb_w, use_eql=use_eql)
    assert out.shape == (B,), out.shape
    max_err = float(jnp.max(jnp.abs(out - ref)))
    assert jnp.allclose(out, ref, rtol=1e-3, atol=1e-3), max_err
    print("KERNEL_OK")
</pallas_src>

<mosaic_0001>
module attributes {stable_mosaic.version = 11 : i64} {
  func.func @kernel(%arg0: memref<8x512xf32, #tpu.memory_space<vmem>>, %arg1: memref<8x1xi32, #tpu.memory_space<vmem>>, %arg2: memref<512x512xf32, #tpu.memory_space<any>>, %arg3: memref<2x512xf32, #tpu.memory_space<vmem>>, %arg4: memref<512x48xf32, #tpu.memory_space<vmem>>, %arg5: memref<3x48xf32, #tpu.memory_space<vmem>>, %arg6: memref<10x48xf32, #tpu.memory_space<vmem>>, %arg7: memref<8x1xf32, #tpu.memory_space<vmem>>, %arg8: memref<512x512xf32, #tpu.memory_space<vmem>>, %arg9: memref<2x!tpu.dma_semaphore, #tpu.memory_space<semaphore_mem>>) attributes {dimension_semantics = [], scalar_prefetch = 0 : i64, scratch_operands = 2 : i64, tpu.core_type = #tpu.core_type<tc>} {
    %c0_i32 = arith.constant 0 : i32
    %c0_i32_0 = arith.constant 0 : i32
    %c0_i32_1 = arith.constant 0 : i32
    %0 = tpu.memref_slice %arg2[%c0_i32_0, %c0_i32_1] : memref<512x512xf32, #tpu.memory_space<any>> -> memref<256x512xf32, #tpu.memory_space<any>>
    %c0_i32_2 = arith.constant 0 : i32
    %c0_i32_3 = arith.constant 0 : i32
    %1 = tpu.memref_slice %arg8[%c0_i32_2, %c0_i32_3] : memref<512x512xf32, #tpu.memory_space<vmem>> -> memref<256x512xf32, #tpu.memory_space<vmem>>
    %2 = tpu.memref_slice %arg9[%c0_i32] : memref<2x!tpu.dma_semaphore, #tpu.memory_space<semaphore_mem>> -> memref<1x!tpu.dma_semaphore, #tpu.memory_space<semaphore_mem>>
    %3 = tpu.memref_squeeze %2 : memref<1x!tpu.dma_semaphore, #tpu.memory_space<semaphore_mem>> -> memref<!tpu.dma_semaphore, #tpu.memory_space<semaphore_mem>>
    tpu.enqueue_dma source(%0 : memref<256x512xf32, #tpu.memory_space<any>>) target(%1 : memref<256x512xf32, #tpu.memory_space<vmem>>) target_semaphore(%3 : memref<!tpu.dma_semaphore, #tpu.memory_space<semaphore_mem>>)
    %c1_i32 = arith.constant 1 : i32
    %c256_i32 = arith.constant 256 : i32
    %c0_i32_4 = arith.constant 0 : i32
    %4 = tpu.memref_slice %arg2[%c256_i32, %c0_i32_4] : memref<512x512xf32, #tpu.memory_space<any>> -> memref<256x512xf32, #tpu.memory_space<any>>
    %c256_i32_5 = arith.constant 256 : i32
    %c0_i32_6 = arith.constant 0 : i32
    %5 = tpu.memref_slice %arg8[%c256_i32_5, %c0_i32_6] : memref<512x512xf32, #tpu.memory_space<vmem>> -> memref<256x512xf32, #tpu.memory_space<vmem>>
    %6 = tpu.memref_slice %arg9[%c1_i32] : memref<2x!tpu.dma_semaphore, #tpu.memory_space<semaphore_mem>> -> memref<1x!tpu.dma_semaphore, #tpu.memory_space<semaphore_mem>>
    %7 = tpu.memref_squeeze %6 : memref<1x!tpu.dma_semaphore, #tpu.memory_space<semaphore_mem>> -> memref<!tpu.dma_semaphore, #tpu.memory_space<semaphore_mem>>
    tpu.enqueue_dma source(%4 : memref<256x512xf32, #tpu.memory_space<any>>) target(%5 : memref<256x512xf32, #tpu.memory_space<vmem>>) target_semaphore(%7 : memref<!tpu.dma_semaphore, #tpu.memory_space<semaphore_mem>>)
    %c0 = arith.constant 0 : index
    %c0_7 = arith.constant 0 : index
    %8 = vector.load %arg0[%c0, %c0_7] : memref<8x512xf32, #tpu.memory_space<vmem>>, vector<8x512xf32>
    %9 = tpu.iota {dimensions = array<i32: 0>} : vector<8x8xi32>
    %10 = tpu.iota {dimensions = array<i32: 1>} : vector<8x8xi32>
    %c2_i32 = arith.constant 2 : i32
    %c0_i32_8 = arith.constant 0 : i32
    %11 = arith.cmpi eq, %c2_i32, %c0_i32_8 : i32
    %c1_i32_9 = arith.constant 1 : i32
    %12 = arith.select %11, %c1_i32_9, %c2_i32 : i32
    %13 = vector.broadcast %12 : i32 to vector<8x8xi32>
    %14 = arith.remsi %9, %13 : vector<8x8xi32>
    %c0_i32_10 = arith.constant 0 : i32
    %15 = vector.broadcast %c0_i32_10 : i32 to vector<8x8xi32>
    %16 = arith.cmpi ne, %14, %15 : vector<8x8xi32>
    %c0_i32_11 = arith.constant 0 : i32
    %17 = vector.broadcast %c0_i32_11 : i32 to vector<8x8xi32>
    %18 = arith.cmpi slt, %14, %17 : vector<8x8xi32>
    %c0_i32_12 = arith.constant 0 : i32
    %19 = arith.cmpi slt, %12, %c0_i32_12 : i32
    %20 = vector.broadcast %19 : i1 to vector<8x8xi1>
    %21 = vector.broadcast %20 : vector<8x8xi1> to vector<8x8xi1>
    %22 = arith.xori %18, %21 : vector<8x8xi1>
    %23 = arith.andi %22, %16 : vector<8x8xi1>
    %24 = vector.broadcast %12 : i32 to vector<8x8xi32>
    %25 = arith.addi %14, %24 : vector<8x8xi32>
    %26 = arith.select %23, %25, %14 : vector<8x8xi1>, vector<8x8xi32>
    %c2_i32_13 = arith.constant 2 : i32
    %c0_i32_14 = arith.constant 0 : i32
    %27 = arith.cmpi eq, %c2_i32_13, %c0_i32_14 : i32
    %c1_i32_15 = arith.constant 1 : i32
    %28 = arith.select %27, %c1_i32_15, %c2_i32_13 : i32
    %29 = vector.broadcast %28 : i32 to vector<8x8xi32>
    %30 = arith.remsi %10, %29 : vector<8x8xi32>
    %c0_i32_16 = arith.constant 0 : i32
    %31 = vector.broadcast %c0_i32_16 : i32 to vector<8x8xi32>
    %32 = arith.cmpi ne, %30, %31 : vector<8x8xi32>
    %c0_i32_17 = arith.constant 0 : i32
    %33 = vector.broadcast %c0_i32_17 : i32 to vector<8x8xi32>
    %34 = arith.cmpi slt, %30, %33 : vector<8x8xi32>
    %c0_i32_18 = arith.constant 0 : i32
    %35 = arith.cmpi slt, %28, %c0_i32_18 : i32
    %36 = vector.broadcast %35 : i1 to vector<8x8xi1>
    %37 = vector.broadcast %36 : vector<8x8xi1> to vector<8x8xi1>
    %38 = arith.xori %34, %37 : vector<8x8xi1>
    %39 = arith.andi %38, %32 : vector<8x8xi1>
    %40 = vector.broadcast %28 : i32 to vector<8x8xi32>
    %41 = arith.addi %30, %40 : vector<8x8xi32>
    %42 = arith.select %39, %41, %30 : vector<8x8xi1>, vector<8x8xi32>
    %43 = arith.cmpi eq, %26, %42 : vector<8x8xi32>
    %cst = arith.constant 2.500000e-01 : f32
    %cst_19 = arith.constant 0.000000e+00 : f32
    %44 = vector.broadcast %cst : f32 to vector<8x8xf32>
    %45 = vector.broadcast %cst_19 : f32 to vector<8x8xf32>
    %46 = arith.select %43, %44, %45 : vector<8x8xi1>, vector<8x8xf32>
    %47 = arith.mulf %8, %8 : vector<8x512xf32>
    %48 = tpu.concatenate %8, %47 in 1 : vector<8x512xf32>, vector<8x512xf32> -> vector<8x1024xf32>
    %cst_20 = arith.constant dense<0.000000e+00> : vector<8x1024xf32>
    %49 = tpu.matmul %46, %48, %cst_20 {dimension_numbers = #tpu.dot_dimension_numbers<[1], [0], [0], [1], [0, 0, 1, 1], [], []>} : vector<8x8xf32>, vector<8x1024xf32>, vector<8x1024xf32> -> vector<8x1024xf32>
    %50 = vector.extract_strided_slice %49 {offsets = [0, 0], sizes = [8, 512], strides = [1, 1]} : vector<8x1024xf32> to vector<8x512xf32>
    %51 = vector.extract_strided_slice %49 {offsets = [0, 512], sizes = [8, 512], strides = [1, 1]} : vector<8x1024xf32> to vector<8x512xf32>
    %52 = arith.mulf %50, %50 : vector<8x512xf32>
    %53 = arith.subf %51, %52 : vector<8x512xf32>
    %cst_21 = arith.constant 0.000000e+00 : f32
    %54 = vector.broadcast %cst_21 : f32 to vector<8x512xf32>
    %55 = arith.maximumf %53, %54 : vector<8x512xf32>
    %cst_22 = arith.constant 9.99999993E-9 : f32
    %56 = vector.broadcast %cst_22 : f32 to vector<8x512xf32>
    %57 = arith.addf %55, %56 : vector<8x512xf32>
    %58 = math.sqrt %57 : vector<8x512xf32>
    %cst_23 = arith.constant dense<0.000000e+00> : vector<8xf32>
    %59 = vector.multi_reduction <add>, %58, %cst_23 [1] : vector<8x512xf32> to vector<8xf32>
    %60 = vector.shape_cast %59 : vector<8xf32> to vector<8x1xf32>
    %cst_24 = arith.constant 5.120000e+02 : f32
    %61 = vector.broadcast %cst_24 : f32 to vector<8x1xf32>
    %62 = arith.divf %60, %61 : vector<8x1xf32>
    %63 = tpu.iota {dimensions = array<i32: 1>} : vector<8x10xi32>
    %c0_25 = arith.constant 0 : index
    %c0_26 = arith.constant 0 : index
    %64 = vector.load %arg1[%c0_25, %c0_26] : memref<8x1xi32, #tpu.memory_space<vmem>>, vector<8x1xi32>
    %65 = vector.broadcast %64 : vector<8x1xi32> to vector<8x10xi32>
    %66 = arith.cmpi eq, %63, %65 : vector<8x10xi32>
    %67 = arith.extui %66 : vector<8x10xi1> to vector<8x10xi32>
    %68 = arith.sitofp %67 : vector<8x10xi32> to vector<8x10xf32>
    %c0_27 = arith.constant 0 : index
    %c0_28 = arith.constant 0 : index
    %69 = vector.load %arg6[%c0_27, %c0_28] : memref<10x48xf32, #tpu.memory_space<vmem>>, vector<10x48xf32>
    %cst_29 = arith.constant dense<0.000000e+00> : vector<8x48xf32>
    %70 = tpu.matmul %68, %69, %cst_29 {dimension_numbers = #tpu.dot_dimension_numbers<[1], [0], [0], [1], [0, 0, 1, 1], [], []>} : vector<8x10xf32>, vector<10x48xf32>, vector<8x48xf32> -> vector<8x48xf32>
    %71 = arith.mulf %70, %70 : vector<8x48xf32>
    %cst_30 = arith.constant dense<0.000000e+00> : vector<8xf32>
    %72 = vector.multi_reduction <add>, %71, %cst_30 [1] : vector<8x48xf32> to vector<8xf32>
    %73 = vector.shape_cast %72 : vector<8xf32> to vector<8x1xf32>
    %74 = math.sqrt %73 : vector<8x1xf32>
    %cst_31 = arith.constant 1.000000e+00 : f32
    %75 = vector.broadcast %cst_31 : f32 to vector<8x1xf32>
    %76 = arith.cmpf ogt, %74, %75 : vector<8x1xf32>
    %cst_32 = arith.constant 1.000000e-07 : f32
    %77 = vector.broadcast %cst_32 : f32 to vector<8x1xf32>
    %78 = arith.addf %74, %77 : vector<8x1xf32>
    %cst_33 = arith.constant 1.000000e+00 : f32
    %79 = vector.broadcast %cst_33 : f32 to vector<8x1xf32>
    %80 = arith.divf %79, %78 : vector<8x1xf32>
    %cst_34 = arith.constant 1.000000e+00 : f32
    %81 = vector.broadcast %cst_34 : f32 to vector<8x1xf32>
    %82 = arith.select %76, %80, %81 : vector<8x1xi1>, vector<8x1xf32>
    %83 = vector.broadcast %82 : vector<8x1xf32> to vector<8x48xf32>
    %84 = arith.mulf %70, %83 : vector<8x48xf32>
    %c0_35 = arith.constant 0 : index
    %c0_36 = arith.constant 0 : index
    %85 = vector.load %arg3[%c0_35, %c0_36] : memref<2x512xf32, #tpu.memory_space<vmem>>, vector<2x512xf32>
    %c0_i32_37 = arith.constant 0 : i32
    %c0_i32_38 = arith.constant 0 : i32
    %c0_i32_39 = arith.constant 0 : i32
    %86 = tpu.memref_slice %arg2[%c0_i32_38, %c0_i32_39] : memref<512x512xf32, #tpu.memory_space<any>> -> memref<256x512xf32, #tpu.memory_space<any>>
    %c0_i32_40 = arith.constant 0 : i32
    %c0_i32_41 = arith.constant 0 : i32
    %87 = tpu.memref_slice %arg8[%c0_i32_40, %c0_i32_41] : memref<512x512xf32, #tpu.memory_space<vmem>> -> memref<256x512xf32, #tpu.memory_space<vmem>>
    %88 = tpu.memref_slice %arg9[%c0_i32_37] : memref<2x!tpu.dma_semaphore, #tpu.memory_space<semaphore_mem>> -> memref<1x!tpu.dma_semaphore, #tpu.memory_space<semaphore_mem>>
    %89 = tpu.memref_squeeze %88 : memref<1x!tpu.dma_semaphore, #tpu.memory_space<semaphore_mem>> -> memref<!tpu.dma_semaphore, #tpu.memory_space<semaphore_mem>>
    tpu.wait_dma2 semaphore(%89 : memref<!tpu.dma_semaphore, #tpu.memory_space<semaphore_mem>>) src(%86 : memref<256x512xf32, #tpu.memory_space<any>>) dst(%87 : memref<256x512xf32, #tpu.memory_space<vmem>>)
    %90 = vector.extract_strided_slice %8 {offsets = [0, 0], sizes = [8, 256], strides = [1, 1]} : vector<8x512xf32> to vector<8x256xf32>
    %c0_42 = arith.constant 0 : index
    %c0_43 = arith.constant 0 : index
    %91 = vector.load %arg8[%c0_42, %c0_43] : memref<512x512xf32, #tpu.memory_space<vmem>>, vector<256x512xf32>
    %cst_44 = arith.constant dense<0.000000e+00> : vector<8x512xf32>
    %92 = tpu.matmul %90, %91, %cst_44 {dimension_numbers = #tpu.dot_dimension_numbers<[1], [0], [0], [1], [0, 0, 1, 1], [], []>} : vector<8x256xf32>, vector<256x512xf32>, vector<8x512xf32> -> vector<8x512xf32>
    %c1_i32_45 = arith.constant 1 : i32
    %c256_i32_46 = arith.constant 256 : i32
    %c0_i32_47 = arith.constant 0 : i32
    %93 = tpu.memref_slice %arg2[%c256_i32_46, %c0_i32_47] : memref<512x512xf32, #tpu.memory_space<any>> -> memref<256x512xf32, #tpu.memory_space<any>>
    %c256_i32_48 = arith.constant 256 : i32
    %c0_i32_49 = arith.constant 0 : i32
    %94 = tpu.memref_slice %arg8[%c256_i32_48, %c0_i32_49] : memref<512x512xf32, #tpu.memory_space<vmem>> -> memref<256x512xf32, #tpu.memory_space<vmem>>
    %95 = tpu.memref_slice %arg9[%c1_i32_45] : memref<2x!tpu.dma_semaphore, #tpu.memory_space<semaphore_mem>> -> memref<1x!tpu.dma_semaphore, #tpu.memory_space<semaphore_mem>>
    %96 = tpu.memref_squeeze %95 : memref<1x!tpu.dma_semaphore, #tpu.memory_space<semaphore_mem>> -> memref<!tpu.dma_semaphore, #tpu.memory_space<semaphore_mem>>
    tpu.wait_dma2 semaphore(%96 : memref<!tpu.dma_semaphore, #tpu.memory_space<semaphore_mem>>) src(%93 : memref<256x512xf32, #tpu.memory_space<any>>) dst(%94 : memref<256x512xf32, #tpu.memory_space<vmem>>)
    %97 = vector.extract_strided_slice %8 {offsets = [0, 256], sizes = [8, 256], strides = [1, 1]} : vector<8x512xf32> to vector<8x256xf32>
    %c256 = arith.constant 256 : index
    %c0_50 = arith.constant 0 : index
    %98 = vector.load %arg8[%c256, %c0_50] : memref<512x512xf32, #tpu.memory_space<vmem>>, vector<256x512xf32>
    %cst_51 = arith.constant dense<0.000000e+00> : vector<8x512xf32>
    %99 = tpu.matmul %97, %98, %cst_51 {dimension_numbers = #tpu.dot_dimension_numbers<[1], [0], [0], [1], [0, 0, 1, 1], [], []>} : vector<8x256xf32>, vector<256x512xf32>, vector<8x512xf32> -> vector<8x512xf32>
    %100 = arith.addf %92, %99 : vector<8x512xf32>
    %101 = vector.extract_strided_slice %85 {offsets = [0, 0], sizes = [1, 512], strides = [1, 1]} : vector<2x512xf32> to vector<1x512xf32>
    %102 = vector.broadcast %62 : vector<8x1xf32> to vector<8x512xf32>
    %103 = vector.broadcast %101 : vector<1x512xf32> to vector<8x512xf32>
    %104 = arith.mulf %102, %103 : vector<8x512xf32>
    %105 = arith.addf %100, %104 : vector<8x512xf32>
    %106 = vector.extract_strided_slice %85 {offsets = [1, 0], sizes = [1, 512], strides = [1, 1]} : vector<2x512xf32> to vector<1x512xf32>
    %107 = vector.broadcast %106 : vector<1x512xf32> to vector<8x512xf32>
    %108 = arith.addf %105, %107 : vector<8x512xf32>
    %cst_52 = arith.constant 0.000000e+00 : f32
    %109 = vector.broadcast %cst_52 : f32 to vector<8x512xf32>
    %110 = arith.cmpf oge, %108, %109 : vector<8x512xf32>
    %cst_53 = arith.constant 2.000000e-01 : f32
    %111 = vector.broadcast %cst_53 : f32 to vector<8x512xf32>
    %112 = arith.mulf %111, %108 : vector<8x512xf32>
    %113 = arith.select %110, %108, %112 : vector<8x512xi1>, vector<8x512xf32>
    %c0_54 = arith.constant 0 : index
    %c0_55 = arith.constant 0 : index
    %114 = vector.load %arg4[%c0_54, %c0_55] : memref<512x48xf32, #tpu.memory_space<vmem>>, vector<512x48xf32>
    %cst_56 = arith.constant dense<0.000000e+00> : vector<8x48xf32>
    %115 = tpu.matmul %113, %114, %cst_56 {dimension_numbers = #tpu.dot_dimension_numbers<[1], [0], [0], [1], [0, 0, 1, 1], [], []>} : vector<8x512xf32>, vector<512x48xf32>, vector<8x48xf32> -> vector<8x48xf32>
    %c0_57 = arith.constant 0 : index
    %c0_58 = arith.constant 0 : index
    %116 = vector.load %arg5[%c0_57, %c0_58] : memref<3x48xf32, #tpu.memory_space<vmem>>, vector<3x48xf32>
    %117 = vector.extract_strided_slice %116 {offsets = [0, 0], sizes = [1, 48], strides = [1, 1]} : vector<3x48xf32> to vector<1x48xf32>
    %118 = vector.broadcast %117 : vector<1x48xf32> to vector<8x48xf32>
    %119 = arith.addf %115, %118 : vector<8x48xf32>
    %cst_59 = arith.constant 0.000000e+00 : f32
    %120 = vector.broadcast %cst_59 : f32 to vector<8x48xf32>
    %121 = arith.cmpf oge, %119, %120 : vector<8x48xf32>
    %cst_60 = arith.constant 2.000000e-01 : f32
    %122 = vector.broadcast %cst_60 : f32 to vector<8x48xf32>
    %123 = arith.mulf %122, %119 : vector<8x48xf32>
    %124 = arith.select %121, %119, %123 : vector<8x48xi1>, vector<8x48xf32>
    %125 = arith.mulf %124, %84 : vector<8x48xf32>
    %cst_61 = arith.constant dense<0.000000e+00> : vector<8xf32>
    %126 = vector.multi_reduction <add>, %125, %cst_61 [1] : vector<8x48xf32> to vector<8xf32>
    %127 = vector.shape_cast %126 : vector<8xf32> to vector<8x1xf32>
    %128 = vector.extract_strided_slice %116 {offsets = [1, 0], sizes = [1, 48], strides = [1, 1]} : vector<3x48xf32> to vector<1x48xf32>
    %129 = vector.broadcast %128 : vector<1x48xf32> to vector<8x48xf32>
    %130 = arith.mulf %124, %129 : vector<8x48xf32>
    %cst_62 = arith.constant dense<0.000000e+00> : vector<8xf32>
    %131 = vector.multi_reduction <add>, %130, %cst_62 [1] : vector<8x48xf32> to vector<8xf32>
    %132 = vector.shape_cast %131 : vector<8xf32> to vector<8x1xf32>
    %133 = vector.extract_strided_slice %116 {offsets = [2, 0], sizes = [1, 1], strides = [1, 1]} : vector<3x48xf32> to vector<1x1xf32>
    %134 = vector.broadcast %133 : vector<1x1xf32> to vector<8x1xf32>
    %135 = arith.addf %132, %134 : vector<8x1xf32>
    %cst_63 = arith.constant 0.000000e+00 : f32
    %136 = vector.broadcast %cst_63 : f32 to vector<8x1xf32>
    %137 = arith.cmpf oge, %135, %136 : vector<8x1xf32>
    %cst_64 = arith.constant 2.000000e-01 : f32
    %138 = vector.broadcast %cst_64 : f32 to vector<8x1xf32>
    %139 = arith.mulf %138, %135 : vector<8x1xf32>
    %140 = arith.select %137, %135, %139 : vector<8x1xi1>, vector<8x1xf32>
    %141 = arith.addf %140, %127 : vector<8x1xf32>
    %c0_65 = arith.constant 0 : index
    %c0_66 = arith.constant 0 : index
    %142 = vector.load %arg7[%c0_65, %c0_66] : memref<8x1xf32, #tpu.memory_space<vmem>>, vector<8x1xf32>
    tpu.vector_store %arg7[%c0_65, %c0_66], %141 {strides = array<i32>} : memref<8x1xf32, #tpu.memory_space<vmem>>, vector<8x1xf32>,
    return
  }
}

</mosaic_0001>

<bundles_post_ra>
// kernel: con_dis_final_block.1
= control target key start
LH: loop header
LB: loop body
LE: loop exit
PB: predicated region body
PF: predicated region fallthrough
CT: control target
= control target key end

     0   :  { %v57_v0 = vlaneseq  ;;  %v1305_v1 = vmov 0   ;;  %vm91_vm0 = vcmask 64512   ;;  %v1306_v15 = vmov 0.0   ;;  %s1307_s15 = smov [#allocation2]   ;;  %s1308_s21 = smov [#allocation2 + $0x400]   ;;  %s2045_s1 = inlined_call_operand.vmem [shape: s32[8,1], index: 1, kind: input, shape index: {}]   ;;  %s2046_s0 = inlined_call_operand.vmem [shape: f32[8,512], index: 0, kind: input, shape index: {}]   ;;  %s2047_s6 = inlined_call_operand.vmem [shape: f32[10,48], index: 6, kind: input, shape index: {}]   ;;  %s2048_s2 = inlined_call_operand.hbm [shape: f32[512,512], index: 2, kind: input, shape index: {}]   ;;  %s2049_s4 = inlined_call_operand.vmem [shape: f32[512,48], index: 4, kind: input, shape index: {}]   ;;  %s2050_s5 = inlined_call_operand.vmem [shape: f32[3,48], index: 5, kind: input, shape index: {}]   ;;  %s2051_s7 = inlined_call_operand.vmem [shape: f32[8,1], index: 7, kind: output, shape index: {}]   ;;  %s2052_s3 = inlined_call_operand.vmem [shape: f32[2,512], index: 3, kind: input, shape index: {}]  }
   0x1   :  { %1238 = vset.pattern.permute.xlu0 %v1305_v1  ;;  %v332_v2 = vld [vmem:[%s2045_s1] sm:$0xff]  ;;  %v1356_v3 = vld [vmem:[%s2046_s0 + $0x10] sm:$0xff]  ;;  %v1361_v4 = vld [vmem:[%s2046_s0 + $0x18] sm:$0xff]  ;;  %vm345_vm2 = vcmask 1041408   ;;  %vm341_vm3 = vcmask 80896   ;;  %vm370_vm13 = vcmask 392192  }
   0x2   :  { %334 = vperm.xlu0 %1238, %v332_v2   ;;  %150 = vmatpush.msra.mxu2 %v1356_v3  ;;  %v58_v5 = vshrl.u32 %v57_v0, 7  ;;  %v60_v6 = vand.u32 127, %v57_v0  ;;  %v1367_v7 = vld [vmem:[%s2046_s0] sm:$0xff]  ;;  %v1372_v8 = vld [vmem:[%s2046_s0 + $0x8] sm:$0xff]  ;;  %v89_v9 = vmul.f32 %v1356_v3, %v1356_v3  ;;  %v90_v10 = vmul.f32 %v1361_v4, %v1361_v4  ;;  %s31_s14 = sshll.u32 %s2048_s2, 4  ;;  %s33_s16 = sshll.u32 %s1307_s15, 4  ;;  %s32_s14 = int_to_ptr.hbm [resolvable:$true] %s31_s14  ;;  %s34_s16 = int_to_ptr.vmem [resolvable:$true] %s33_s16 }
   0x3   :  { %2059 = vst [vmem:[#allocation12_spill] sm:$0xff] %v1367_v7  ;;  %170 = vmatpush.msra.mxu3 %v1361_v4  ;;  %110 = vmatpush.msra.mxu0 %v1367_v7  ;;  %v87_v11 = vmul.f32 %v1367_v7, %v1367_v7  ;;  %v88_v12 = vmul.f32 %v1372_v8, %v1372_v8  ;;  %v340_v17 = vld [vmem:[%s2047_s6 + $0x8] sm:$0x3]  ;;  %v339_v18 = vld [vmem:[%s2047_s6] sm:$0xff]  ;;  %36 = dma.hbm_to_vmem [thread:$0]  %s32_s14, 16384, %s34_s16, [#allocation3] }
   0x4   :  { %2060 = vst [vmem:[#allocation13_spill] sm:$0xff] %v1372_v8  ;;  %v65_v13 = vand.u32 1, %v58_v5  ;;  %v77_v14 = vand.u32 1, %v60_v6  ;;  %130 = vmatpush.msra.mxu1 %v1372_v8  ;;  %230 = vmatpush.msrb.mxu2 %v89_v9  ;;  %s37_s19 = scalar_lea.hbm %s2048_s2, 1024  ;;  %s49_s22 = sshll.u32 %s1308_s21, 4  ;;  %s50_s22 = int_to_ptr.vmem [resolvable:$true] %s49_s22 }
   0x5   :  { %250 = vmatpush.msrb.mxu3 %v90_v10  ;;  %190 = vmatpush.msrb.mxu0 %v87_v11  ;;  %s47_s20 = sshll.u32 %s37_s19, 4  ;;  %s48_s20 = int_to_ptr.hbm [resolvable:$true] %s47_s20 }
   0x6   :  { %vm85_vm1 = vcmp.eq.s32.totalorder %v65_v13, %v77_v14  ;;  %210 = vmatpush.msrb.mxu1 %v88_v12  ;;  %52 = dma.hbm_to_vmem [thread:$0]  %s48_s20, 16384, %s50_s22, [#allocation3 + $0x1] }
   0x7   :  { %v86_v16 = vsel %vm85_vm1, 0.25, %v1306_v15 }
   0x8   :  { %1222 = vmatmul.msk.f32.vlgmr.msra.gmra.mxu2 %vm91_vm0, %v86_v16  ;;  %1223 = vmatmul.msk.f32.vlgmr.msra.gmra.mxu3 %vm91_vm0, %v86_v16 }
   0x9   :  { %1220 = vmatmul.msk.f32.vlgmr.msra.gmra.mxu0 %vm91_vm0, %v86_v16  ;;  %1221 = vmatmul.msk.f32.vlgmr.msra.gmra.mxu1 %vm91_vm0, %v86_v16 }
   0xa   :  { %1229 = vmatpush.msk.msra.mxu0 %vm345_vm2, %v340_v17 }
   0xc   :  { %364 = vmatpush.msra.mxu0 %v339_v18 }
  0x10   :  { %1226 = vmatmul.msk.f32.vlgmr.msrb.gmra.mxu2 %vm91_vm0, %v86_v16  ;;  %1227 = vmatmul.msk.f32.vlgmr.msrb.gmra.mxu3 %vm91_vm0, %v86_v16 }
  0x11   :  { %1224 = vmatmul.msk.f32.vlgmr.msrb.gmra.mxu0 %vm91_vm0, %v86_v16  ;;  %1225 = vmatmul.msk.f32.vlgmr.msrb.gmra.mxu1 %vm91_vm0, %v86_v16 }
  0x74   :  { %v335_v19 = vpop.permute.xlu0 %334 }
  0x75   :  { %vm336_vm4 = vcmp.eq.s32.totalorder %v60_v6, %v335_v19 }
  0x76   :  { %v1228_v20 = vsel %vm336_vm4, 1.0, %v1306_v15 }
  0x77   :  { %1230 = vmatmul.msk.f32.vlgmr.msra.gmra.mxu0 %vm341_vm3, %v1228_v20 }
  0x86   :  { %v112_v21 = vpop.f32.mrf.mxu0  ;;  %v132_v22 = vpop.f32.mrf.mxu1 }
  0x87   :  { %v255_v25 = vmul.f32 %v112_v21, %v112_v21  ;;  %v256_v26 = vmul.f32 %v132_v22, %v132_v22 }
  0x8b   :  { %v152_v23 = vpop.f32.mrf.mxu2  ;;  %v172_v24 = vpop.f32.mrf.mxu3 }
  0x8c   :  { %v257_v29 = vmul.f32 %v152_v23, %v152_v23  ;;  %v258_v33 = vmul.f32 %v172_v24, %v172_v24 }
  0x8e   :  { %v192_v27 = vpop.f32.mrf.mxu0  ;;  %v212_v28 = vpop.f32.mrf.mxu1 }
  0x8f   :  { %v259_v30 = vsub.f32 %v192_v27, %v255_v25  ;;  %v260_v32 = vsub.f32 %v212_v28, %v256_v26 }
  0x91   :  { %v263_v35 = vmax.f32 %v259_v30, 0.0  ;;  %v264_v37 = vmax.f32 %v260_v32, 0.0 }
  0x93   :  { %v232_v31 = vpop.f32.mrf.mxu2  ;;  %v252_v36 = vpop.f32.mrf.mxu3  ;;  %v267_v40 = vadd.f32 1e-08, %v263_v35  ;;  %v268_v41 = vadd.f32 1e-08, %v264_v37 }
  0x94   :  { %v261_v34 = vsub.f32 %v232_v31, %v257_v29  ;;  %v262_v39 = vsub.f32 %v252_v36, %v258_v33  ;;  %v1309_v31 = vmov 512.0  }
  0x95   :  { %1239 = vrsqrt.f32 %v267_v40  ;;  %vm278_vm5 = vcmp.eq.f32.partialorder %v267_v40, inf  ;;  %v281_v10 = vand.u32 2147483648, %v267_v40  ;;  %vm290_vm6 = vcmp.eq.f32.partialorder %v268_v41, inf }
  0x96   :  { %v265_v38 = vmax.f32 %v261_v34, 0.0  ;;  %v266_v43 = vmax.f32 %v262_v39, 0.0  ;;  %1241 = vrsqrt.f32 %v268_v41  ;;  %v293_v11 = vand.u32 2147483648, %v268_v41 }
  0x97   :  { %vm280_vm7 = vcmp.eq.f32.partialorder %v267_v40, 0.0  ;;  %vm292_vm8 = vcmp.eq.f32.partialorder %v268_v41, 0.0 }
  0x98   :  { %v269_v42 = vadd.f32 1e-08, %v265_v38  ;;  %v270_v44 = vadd.f32 1e-08, %v266_v43 }
  0x9a   :  { %1243 = vrsqrt.f32 %v269_v42  ;;  %vm302_vm9 = vcmp.eq.f32.partialorder %v269_v42, inf  ;;  %vm304_vm10 = vcmp.eq.f32.partialorder %v269_v42, 0.0  ;;  %v305_v17 = vand.u32 2147483648, %v269_v42 }
  0x9b   :  { %v1240_v45 = vpop.eup %1239  ;;  %1245 = vrsqrt.f32 %v270_v44  ;;  %vm314_vm11 = vcmp.eq.f32.partialorder %v270_v44, inf  ;;  %v317_v21 = vand.u32 2147483648, %v270_v44  ;;  %vm316_vm12 = vcmp.eq.f32.partialorder %v270_v44, 0.0 }
  0x9c   :  { %v1242_v46 = vpop.eup %1241  ;;  %v272_v48 = vmul.f32 %v1240_v45, %v267_v40  ;;  %1247 = vrcp.f32 %v1309_v31 }
  0x9d   :  { %v284_v49 = vmul.f32 %v1242_v46, %v268_v41 }
  0x9e   :  { %v273_v50 = vmul.f32 %v1240_v45, %v272_v48 }
  0x9f   :  { %v285_v51 = vmul.f32 %v1242_v46, %v284_v49 }
  0xa0   :  { %v1244_v47 = vpop.eup %1243  ;;  %v274_v54 = vmul.f32 0.5, %v273_v50 }
  0xa1   :  { %v296_v52 = vmul.f32 %v1244_v47, %v269_v42  ;;  %v1246_v53 = vpop.eup %1245  ;;  %v286_v55 = vmul.f32 0.5, %v285_v51 }
  0xa2   :  { %v308_v57 = vmul.f32 %v1246_v53, %v270_v44  ;;  %v275_v58 = vsub.f32 1.5, %v274_v54  ;;  %v1248_v32 = vpop.eup %1247 }
  0xa3   :  { %v297_v56 = vmul.f32 %v1244_v47, %v296_v52  ;;  %v287_v59 = vsub.f32 1.5, %v286_v55  ;;  %v325_v33 = vmul.f32 512.0, %v1248_v32  ;;  %vm329_vm14 = vweird.f32 %v1248_v32 }
  0xa4   :  { %v309_v61 = vmul.f32 %v1246_v53, %v308_v57  ;;  %v276_v62 = vmul.f32 %v1240_v45, %v275_v58 }
  0xa5   :  { %v298_v60 = vmul.f32 0.5, %v297_v56  ;;  %v288_v63 = vmul.f32 %v1242_v46, %v287_v59  ;;  %v326_v34 = vsub.f32 1.0, %v325_v33 }
  0xa6   :  { %v310_v1 = vmul.f32 0.5, %v309_v61  ;;  %v277_v2 = vmul.f32 %v276_v62, %v267_v40 }
  0xa7   :  { %v299_v0 = vsub.f32 1.5, %v298_v60  ;;  %v289_v5 = vmul.f32 %v288_v63, %v268_v41  ;;  %v327_v35 = vmul.f32 %v1248_v32, %v326_v34 }
  0xa8   :  { %v311_v9 = vsub.f32 1.5, %v310_v1  ;;  %v279_v12 = vsel %vm278_vm5, %v267_v40, %v277_v2 }
  0xa9   :  { %v300_v6 = vmul.f32 %v1244_v47, %v299_v0  ;;  %v291_v13 = vsel %vm290_vm6, %v268_v41, %v289_v5  ;;  %v282_v14 = vsel %vm280_vm7, %v281_v10, %v279_v12  ;;  %v328_v36 = vadd.f32 %v1248_v32, %v327_v35 }
  0xaa   :  { %v294_v15 = vsel %vm292_vm8, %v293_v11, %v291_v13  ;;  %v312_v18 = vmul.f32 %v1246_v53, %v311_v9 }
  0xab   :  { %v301_v16 = vmul.f32 %v300_v6, %v269_v42  ;;  %v319_v19 = vadd.f32 %v294_v15, %v282_v14  ;;  %v330_v37 = vsel %vm329_vm14, %v1248_v32, %v328_v36 }
  0xac   :  { %v313_v23 = vmul.f32 %v312_v18, %v270_v44 }
  0xad   :  { %v303_v20 = vsel %vm302_vm9, %v269_v42, %v301_v16 }
  0xae   :  { %v306_v22 = vsel %vm304_vm10, %v305_v17, %v303_v20  ;;  %v315_v25 = vsel %vm314_vm11, %v270_v44, %v313_v23  ;;  %v1415_v44 = vld [vmem:[%s2052_s3] sm:$0xff] }
  0xaf   :  { %v320_v24 = vadd.f32 %v319_v19, %v306_v22  ;;  %v318_v26 = vsel %vm316_vm12, %v317_v21, %v315_v25  ;;  %2062 = vst [vmem:[#allocation15_spill] sm:$0xff] %v1415_v44 }
  0xb1   :  { %v321_v27 = vadd.f32 %v320_v24, %v318_v26 }
  0xb3   :  { %322 = vadd.xlane.f32.xlu1 %v321_v27 }
  0xf4   :  { %v1399_v28 = vpop.f32.mrf.mxu0 }
  0xf5   :  { %v369_v29 = vmul.f32 %v1399_v28, %v1399_v28 }
  0xf7   :  { %v371_v30 = vsel %vm370_vm13, %v369_v29, 0.0 }
  0xf8   :  { %372 = vadd.xlane.f32.xlu0 %v371_v30 }
 0x126   :  { %v323_v38 = vpop.xlane.xlu1 %322 }
 0x127   :  { %v1410_v39 = vmul.f32 %v330_v37, %v323_v38 }
 0x129   :  { %2061 = vst [vmem:[#allocation14_spill] sm:$0xff] %v1410_v39 }
 0x16b   :  { %v373_v40 = vpop.xlane.xlu0 %372 }
 0x16c   :  { %1249 = vrsqrt.f32 %v373_v40  ;;  %vm381_vm15 = vcmp.eq.f32.partialorder %v373_v40, inf  ;;  %v384_v49 = vand.u32 2147483648, %v373_v40  ;;  %vm383_vm0 = vcmp.eq.f32.partialorder %v373_v40, 0.0 }
 0x172   :  { %v1250_v41 = vpop.eup %1249 }
 0x173   :  { %v375_v42 = vmul.f32 %v1250_v41, %v373_v40 }
 0x175   :  { %v376_v43 = vmul.f32 %v1250_v41, %v375_v42 }
 0x177   :  { %v377_v45 = vmul.f32 0.5, %v376_v43 }
 0x179   :  { %v378_v46 = vsub.f32 1.5, %v377_v45 }
 0x17b   :  { %v379_v47 = vmul.f32 %v1250_v41, %v378_v46 }
 0x17d   :  { %v380_v48 = vmul.f32 %v379_v47, %v373_v40 }
 0x17f   :  { %v382_v50 = vsel %vm381_vm15, %v373_v40, %v380_v48 }
 0x180   :  { %v385_v51 = vsel %vm383_vm0, %v384_v49, %v382_v50 }
 0x181   :  { %v387_v52 = vadd.f32 1e-07, %v385_v51  ;;  %vm386_vm5 = vcmp.gt.f32.partialorder %v385_v51, 1.0 }
 0x183   :  { %1251 = vrcp.f32 %v387_v52  ;;  %v399_v56 = vand.u32 2147483648, %v387_v52  ;;  %v397_v58 = vand.u32 2147483647, %v387_v52  ;;  %vm393_vm2 = vweird.f32 %v387_v52 }
 0x185   :  { %v400_v60 = vor.u32 1.1754944e-38, %v399_v56  ;;  %vm398_vm4 = vcmp.eq.f32.partialorder %v397_v58, 8.507059e+37 }
 0x189   :  { %v1252_v53 = vpop.eup %1251 }
 0x18a   :  { %v389_v54 = vmul.f32 %v1252_v53, %v387_v52  ;;  %vm394_vm1 = vweird.f32 %v1252_v53 }
 0x18b   :  { %vm395_vm3 = vmor %vm393_vm2, %vm394_vm1 }
 0x18c   :  { %v390_v55 = vsub.f32 1.0, %v389_v54 }
 0x18e   :  { %v391_v57 = vmul.f32 %v1252_v53, %v390_v55 }
 0x190   :  { %v392_v59 = vadd.f32 %v1252_v53, %v391_v57 }
 0x192   :  { %v396_v61 = vsel %vm395_vm3, %v1252_v53, %v392_v59 }
 0x193   :  { %v401_v62 = vsel %vm398_vm4, %v400_v60, %v396_v61 }
 0x194   :  { %v403_v63 = vsel %vm386_vm5, %v401_v62, 1.0 }
 0x195   :  { %v1418_v0 = vmul.f32 %v403_v63, %v1399_v28 }
 0x197   :  { %2063 = vst [vmem:[#allocation16_spill] sm:$0xff] %v1418_v0 }
 0x198   :  { %1301 = dma.done.wait [#allocation3], 16384 }
 0x199   :  { %1302 = vsyncadd [#allocation3], 4294950912  ;;  %v1420_v1 = vld [vmem:[#allocation2] sm:$0xff]  ;;  %v1422_v2 = vld [vmem:[#allocation2 + $0x8] sm:$0xff] }
 0x19a   :  { %2064 = vst [vmem:[#allocation17_spill] sm:$0xff] %v1420_v1  ;;  %v1424_v5 = vld [vmem:[#allocation2 + $0x10] sm:$0xff]  ;;  %v1426_v6 = vld [vmem:[#allocation2 + $0x18] sm:$0xff]  ;;  %v1428_v9 = vld [vmem:[#allocation2 + $0x20] sm:$0xff] }
 0x19b   :  { %2065 = vst [vmem:[#allocation18_spill] sm:$0xff] %v1422_v2  ;;  %v1430_v10 = vld [vmem:[#allocation2 + $0x28] sm:$0xff]  ;;  %v1432_v11 = vld [vmem:[#allocation2 + $0x30] sm:$0xff]  ;;  %v1434_v12 = vld [vmem:[#allocation2 + $0x38] sm:$0xff] }
 0x19c   :  { %2066 = vst [vmem:[#allocation19_spill] sm:$0xff] %v1424_v5  ;;  %v1436_v13 = vld [vmem:[#allocation2 + $0x40] sm:$0xff]  ;;  %v1438_v14 = vld [vmem:[#allocation2 + $0x48] sm:$0xff]  ;;  %v1440_v15 = vld [vmem:[#allocation2 + $0x50] sm:$0xff] }
 0x19d   :  { %2067 = vst [vmem:[#allocation20_spill] sm:$0xff] %v1426_v6  ;;  %v1442_v16 = vld [vmem:[#allocation2 + $0x58] sm:$0xff]  ;;  %v1444_v17 = vld [vmem:[#allocation2 + $0x60] sm:$0xff]  ;;  %v1446_v18 = vld [vmem:[#allocation2 + $0x68] sm:$0xff] }
 0x19e   :  { %2068 = vst [vmem:[#allocation21_spill] sm:$0xff] %v1428_v9  ;;  %v1448_v19 = vld [vmem:[#allocation2 + $0x70] sm:$0xff]  ;;  %v1450_v20 = vld [vmem:[#allocation2 + $0x78] sm:$0xff]  ;;  %v1452_v21 = vld [vmem:[#allocation2 + $0x80] sm:$0xff] }
 0x19f   :  { %2069 = vst [vmem:[#allocation22_spill] sm:$0xff] %v1430_v10  ;;  %v1454_v22 = vld [vmem:[#allocation2 + $0x88] sm:$0xff]  ;;  %v1456_v23 = vld [vmem:[#allocation2 + $0x90] sm:$0xff]  ;;  %v1458_v24 = vld [vmem:[#allocation2 + $0x98] sm:$0xff] }
 0x1a0   :  { %2070 = vst [vmem:[#allocation23_spill] sm:$0xff] %v1432_v11  ;;  %v1460_v25 = vld [vmem:[#allocation2 + $0xa0] sm:$0xff]  ;;  %v1462_v26 = vld [vmem:[#allocation2 + $0xa8] sm:$0xff]  ;;  %v1464_v27 = vld [vmem:[#allocation2 + $0xb0] sm:$0xff] }
 0x1a1   :  { %2071 = vst [vmem:[#allocation24_spill] sm:$0xff] %v1434_v12  ;;  %v1466_v28 = vld [vmem:[#allocation2 + $0xb8] sm:$0xff]  ;;  %v1468_v29 = vld [vmem:[#allocation2 + $0xc0] sm:$0xff]  ;;  %v1470_v30 = vld [vmem:[#allocation2 + $0xc8] sm:$0xff] }
 0x1a2   :  { %2072 = vst [vmem:[#allocation25_spill] sm:$0xff] %v1436_v13  ;;  %v1472_v31 = vld [vmem:[#allocation2 + $0xd0] sm:$0xff]  ;;  %v1474_v32 = vld [vmem:[#allocation2 + $0xd8] sm:$0xff]  ;;  %v1476_v33 = vld [vmem:[#allocation2 + $0xe0] sm:$0xff] }
 0x1a3   :  { %2073 = vst [vmem:[#allocation26_spill] sm:$0xff] %v1438_v14  ;;  %v1478_v34 = vld [vmem:[#allocation2 + $0xe8] sm:$0xff]  ;;  %v1480_v35 = vld [vmem:[#allocation2 + $0xf0] sm:$0xff]  ;;  %v1482_v36 = vld [vmem:[#allocation2 + $0xf8] sm:$0xff] }
 0x1a4   :  { %2074 = vst [vmem:[#allocation27_spill] sm:$0xff] %v1440_v15  ;;  %v1484_v37 = vld [vmem:[#allocation2 + $0x100] sm:$0xff]  ;;  %v1486_v38 = vld [vmem:[#allocation2 + $0x108] sm:$0xff]  ;;  %v1488_v40 = vld [vmem:[#allocation2 + $0x110] sm:$0xff] }
 0x1a5   :  { %2075 = vst [vmem:[#allocation28_spill] sm:$0xff] %v1442_v16  ;;  %v1490_v41 = vld [vmem:[#allocation2 + $0x118] sm:$0xff]  ;;  %v1492_v42 = vld [vmem:[#allocation2 + $0x120] sm:$0xff]  ;;  %v1494_v43 = vld [vmem:[#allocation2 + $0x128] sm:$0xff] }
 0x1a6   :  { %2076 = vst [vmem:[#allocation29_spill] sm:$0xff] %v1446_v18  ;;  %v1496_v45 = vld [vmem:[#allocation2 + $0x130] sm:$0xff]  ;;  %v1498_v46 = vld [vmem:[#allocation2 + $0x138] sm:$0xff]  ;;  %v1500_v47 = vld [vmem:[#allocation2 + $0x140] sm:$0xff] }
 0x1a7   :  { %2077 = vst [vmem:[#allocation30_spill] sm:$0xff] %v1448_v19  ;;  %v1502_v48 = vld [vmem:[#allocation2 + $0x148] sm:$0xff]  ;;  %v1504_v49 = vld [vmem:[#allocation2 + $0x150] sm:$0xff]  ;;  %v1506_v50 = vld [vmem:[#allocation2 + $0x158] sm:$0xff] }
 0x1a8   :  { %2078 = vst [vmem:[#allocation31_spill] sm:$0xff] %v1450_v20  ;;  %v1508_v51 = vld [vmem:[#allocation2 + $0x160] sm:$0xff]  ;;  %v1510_v52 = vld [vmem:[#allocation2 + $0x168] sm:$0xff]  ;;  %v1512_v53 = vld [vmem:[#allocation2 + $0x170] sm:$0xff] }
 0x1a9   :  { %2079 = vst [vmem:[#allocation32_spill] sm:$0xff] %v1456_v23  ;;  %v1514_v54 = vld [vmem:[#allocation2 + $0x178] sm:$0xff]  ;;  %v1516_v55 = vld [vmem:[#allocation2 + $0x180] sm:$0xff]  ;;  %v1518_v56 = vld [vmem:[#allocation2 + $0x188] sm:$0xff] }
 0x1aa   :  { %2080 = vst [vmem:[#allocation33_spill] sm:$0xff] %v1458_v24  ;;  %v1520_v57 = vld [vmem:[#allocation2 + $0x190] sm:$0xff]  ;;  %v1522_v58 = vld [vmem:[#allocation2 + $0x198] sm:$0xff]  ;;  %v1524_v59 = vld [vmem:[#allocation2 + $0x1a0] sm:$0xff] }
 0x1ab   :  { %2081 = vst [vmem:[#allocation34_spill] sm:$0xff] %v1464_v27  ;;  %v1526_v60 = vld [vmem:[#allocation2 + $0x1a8] sm:$0xff]  ;;  %v1528_v61 = vld [vmem:[#allocation2 + $0x1b0] sm:$0xff]  ;;  %v1530_v62 = vld [vmem:[#allocation2 + $0x1b8] sm:$0xff] }
 0x1ac   :  { %2082 = vst [vmem:[#allocation35_spill] sm:$0xff] %v1466_v28  ;;  %v1532_v63 = vld [vmem:[#allocation2 + $0x1c0] sm:$0xff]  ;;  %v1534_v0 = vld [vmem:[#allocation2 + $0x1c8] sm:$0xff]  ;;  %v1536_v39 = vld [vmem:[#allocation2 + $0x1d0] sm:$0xff] }
 0x1ad   :  { %2083 = vst [vmem:[#allocation36_spill] sm:$0xff] %v1472_v31  ;;  %v1538_v44 = vld [vmem:[#allocation2 + $0x1d8] sm:$0xff]  ;;  %v1540_v6 = vld [vmem:[#allocation2 + $0x1e0] sm:$0xff]  ;;  %v1542_v5 = vld [vmem:[#allocation2 + $0x1e8] sm:$0xff] }
 0x1ae   :  { %2084 = vst [vmem:[#allocation37_spill] sm:$0xff] %v1474_v32  ;;  %v1544_v12 = vld [vmem:[#allocation2 + $0x1f0] sm:$0xff]  ;;  %v1546_v11 = vld [vmem:[#allocation2 + $0x1f8] sm:$0xff]  ;;  %v1548_v16 = vld [vmem:[#allocation2 + $0x200] sm:$0xff] }
 0x1af   :  { %2085 = vst [vmem:[#allocation38_spill] sm:$0xff] %v1480_v35  ;;  %v1550_v15 = vld [vmem:[#allocation2 + $0x208] sm:$0xff]  ;;  %v1552_v20 = vld [vmem:[#allocation2 + $0x210] sm:$0xff]  ;;  %v1554_v19 = vld [vmem:[#allocation2 + $0x218] sm:$0xff] }
 0x1b0   :  { %2086 = vst [vmem:[#allocation39_spill] sm:$0xff] %v1482_v36  ;;  %v1556_v24 = vld [vmem:[#allocation2 + $0x220] sm:$0xff]  ;;  %v1558_v23 = vld [vmem:[#allocation2 + $0x228] sm:$0xff]  ;;  %v1560_v28 = vld [vmem:[#allocation2 + $0x230] sm:$0xff] }
 0x1b1   :  { %2087 = vst [vmem:[#allocation40_spill] sm:$0xff] %v1488_v40  ;;  %v1562_v27 = vld [vmem:[#allocation2 + $0x238] sm:$0xff]  ;;  %v1564_v32 = vld [vmem:[#allocation2 + $0x240] sm:$0xff]  ;;  %v1566_v31 = vld [vmem:[#allocation2 + $0x248] sm:$0xff] }
 0x1b2   :  { %2088 = vst [vmem:[#allocation41_spill] sm:$0xff] %v1490_v41  ;;  %v1568_v36 = vld [vmem:[#allocation2 + $0x250] sm:$0xff]  ;;  %v1570_v35 = vld [vmem:[#allocation2 + $0x258] sm:$0xff]  ;;  %v1572_v41 = vld [vmem:[#allocation2 + $0x260] sm:$0xff] }
 0x1b3   :  { %2089 = vst [vmem:[#allocation42_spill] sm:$0xff] %v1496_v45  ;;  %v1578_v40 = vld [vmem:[#allocation2 + $0x278] sm:$0xff]  ;;  %v1652_v8 = vld [vmem:[#allocation2 + $0x3a0] sm:$0xff] }
 0x1b4   :  { %2090 = vst [vmem:[#allocation43_spill] sm:$0xff] %v1498_v46  ;;  %v1580_v46 = vld [vmem:[#allocation2 + $0x280] sm:$0xff]  ;;  %v1586_v45 = vld [vmem:[#allocation2 + $0x298] sm:$0xff] }
 0x1b5   :  { %2091 = vst [vmem:[#allocation44_spill] sm:$0xff] %v1504_v49  ;;  %v1594_v49 = vld [vmem:[#allocation2 + $0x2b8] sm:$0xff] }
 0x1b6   :  { %2092 = vst [vmem:[#allocation45_spill] sm:$0xff] %v1506_v50  ;;  %v1588_v50 = vld [vmem:[#allocation2 + $0x2a0] sm:$0xff]  ;;  %v1658_v7 = vld [vmem:[#allocation2 + $0x3b8] sm:$0xff] }
 0x1b7   :  { %2093 = vst [vmem:[#allocation46_spill] sm:$0xff] %v1512_v53  ;;  %v1602_v53 = vld [vmem:[#allocation2 + $0x2d8] sm:$0xff] }
 0x1b8   :  { %2094 = vst [vmem:[#allocation47_spill] sm:$0xff] %v1514_v54  ;;  %v1596_v54 = vld [vmem:[#allocation2 + $0x2c0] sm:$0xff]  ;;  %v1666_v2 = vld [vmem:[#allocation2 + $0x3d8] sm:$0xff] }
 0x1b9   :  { %2095 = vst [vmem:[#allocation48_spill] sm:$0xff] %v1520_v57  ;;  %v1612_v57 = vld [vmem:[#allocation2 + $0x300] sm:$0xff]  ;;  %v1674_v1 = vld [vmem:[#allocation2 + $0x3f8] sm:$0xff] }
 0x1ba   :  { %2096 = vst [vmem:[#allocation49_spill] sm:$0xff] %v1522_v58  ;;  %v1610_v58 = vld [vmem:[#allocation2 + $0x2f8] sm:$0xff] }
 0x1bb   :  { %2097 = vst [vmem:[#allocation50_spill] sm:$0xff] %v1528_v61  ;;  %v1626_v61 = vld [vmem:[#allocation2 + $0x338] sm:$0xff] }
 0x1bc   :  { %2098 = vst [vmem:[#allocation51_spill] sm:$0xff] %v1530_v62  ;;  %v1620_v62 = vld [vmem:[#allocation2 + $0x320] sm:$0xff] }
 0x1bd   :  { %2099 = vst [vmem:[#allocation52_spill] sm:$0xff] %v1536_v39  ;;  %v1636_v39 = vld [vmem:[#allocation2 + $0x360] sm:$0xff] }
 0x1be   :  { %2100 = vst [vmem:[#allocation53_spill] sm:$0xff] %v1538_v44  ;;  %v1634_v44 = vld [vmem:[#allocation2 + $0x358] sm:$0xff] }
 0x1bf   :  { %2101 = vst [vmem:[#allocation54_spill] sm:$0xff] %v1544_v12  ;;  %v1650_v12 = vld [vmem:[#allocation2 + $0x398] sm:$0xff] }
 0x1c0   :  { %2102 = vst [vmem:[#allocation55_spill] sm:$0xff] %v1546_v11  ;;  %v1644_v11 = vld [vmem:[#allocation2 + $0x380] sm:$0xff] }
 0x1c1   :  { %2103 = vst [vmem:[#allocation56_spill] sm:$0xff] %v1548_v16  ;;  %v1668_v16 = vld [vmem:[#allocation2 + $0x3e0] sm:$0xff] }
 0x1c2   :  { %2104 = vst [vmem:[#allocation57_spill] sm:$0xff] %v1550_v15  ;;  %v1604_v15 = vld [vmem:[#allocation2 + $0x2e0] sm:$0xff] }
 0x1c3   :  { %2105 = vst [vmem:[#allocation58_spill] sm:$0xff] %v1552_v20  ;;  %v1574_v20 = vld [vmem:[#allocation2 + $0x268] sm:$0xff] }
 0x1c4   :  { %2106 = vst [vmem:[#allocation59_spill] sm:$0xff] %v1554_v19  ;;  %v1576_v19 = vld [vmem:[#allocation2 + $0x270] sm:$0xff] }
 0x1c5   :  { %2107 = vst [vmem:[#allocation60_spill] sm:$0xff] %v1556_v24 }
 0x1c6   :  { %2108 = vst [vmem:[#allocation61_spill] sm:$0xff] %v1558_v23  ;;  %v1618_v23 = vld [vmem:[#allocation2 + $0x318] sm:$0xff] }
 0x1c7   :  { %2109 = vst [vmem:[#allocation62_spill] sm:$0xff] %v1560_v28  ;;  %v1582_v28 = vld [vmem:[#allocation2 + $0x288] sm:$0xff] }
 0x1c8   :  { %2110 = vst [vmem:[#allocation63_spill] sm:$0xff] %v1562_v27  ;;  %v1584_v27 = vld [vmem:[#allocation2 + $0x290] sm:$0xff] }
 0x1c9   :  { %2111 = vst [vmem:[#allocation64_spill] sm:$0xff] %v1564_v32 }
 0x1ca   :  { %2112 = vst [vmem:[#allocation65_spill] sm:$0xff] %v1566_v31  ;;  %v1628_v31 = vld [vmem:[#allocation2 + $0x340] sm:$0xff] }
 0x1cb   :  { %2113 = vst [vmem:[#allocation66_spill] sm:$0xff] %v1568_v36  ;;  %v1590_v36 = vld [vmem:[#allocation2 + $0x2a8] sm:$0xff] }
 0x1cc   :  { %2114 = vst [vmem:[#allocation67_spill] sm:$0xff] %v1570_v35  ;;  %v1592_v35 = vld [vmem:[#allocation2 + $0x2b0] sm:$0xff] }
 0x1cd   :  { %2115 = vst [vmem:[#allocation68_spill] sm:$0xff] %v1574_v20  ;;  %v1642_v20 = vld [vmem:[#allocation2 + $0x378] sm:$0xff] }
 0x1ce   :  { %2116 = vst [vmem:[#allocation69_spill] sm:$0xff] %v1576_v19  ;;  %v1598_v19 = vld [vmem:[#allocation2 + $0x2c8] sm:$0xff] }
 0x1cf   :  { %2117 = vst [vmem:[#allocation70_spill] sm:$0xff] %v1578_v40  ;;  %v1600_v40 = vld [vmem:[#allocation2 + $0x2d0] sm:$0xff] }
 0x1d0   :  { %2118 = vst [vmem:[#allocation71_spill] sm:$0xff] %v1582_v28  ;;  %v1660_v28 = vld [vmem:[#allocation2 + $0x3c0] sm:$0xff] }
 0x1d1   :  { %2119 = vst [vmem:[#allocation72_spill] sm:$0xff] %v1584_v27  ;;  %v1606_v27 = vld [vmem:[#allocation2 + $0x2e8] sm:$0xff] }
 0x1d2   :  { %2120 = vst [vmem:[#allocation73_spill] sm:$0xff] %v1586_v45  ;;  %v1608_v45 = vld [vmem:[#allocation2 + $0x2f0] sm:$0xff] }
 0x1d3   :  { %2121 = vst [vmem:[#allocation74_spill] sm:$0xff] %v1590_v36 }
 0x1d4   :  { %2122 = vst [vmem:[#allocation75_spill] sm:$0xff] %v1592_v35  ;;  %v1614_v35 = vld [vmem:[#allocation2 + $0x308] sm:$0xff] }
 0x1d5   :  { %2123 = vst [vmem:[#allocation76_spill] sm:$0xff] %v1594_v49  ;;  %v1616_v49 = vld [vmem:[#allocation2 + $0x310] sm:$0xff] }
 0x1d6   :  { %2124 = vst [vmem:[#allocation77_spill] sm:$0xff] %v1598_v19 }
 0x1d7   :  { %2125 = vst [vmem:[#allocation78_spill] sm:$0xff] %v1600_v40  ;;  %v1622_v40 = vld [vmem:[#allocation2 + $0x328] sm:$0xff] }
 0x1d8   :  { %2126 = vst [vmem:[#allocation79_spill] sm:$0xff] %v1602_v53  ;;  %v1624_v53 = vld [vmem:[#allocation2 + $0x330] sm:$0xff] }
 0x1d9   :  { %2127 = vst [vmem:[#allocation80_spill] sm:$0xff] %v1606_v27 }
 0x1da   :  { %2128 = vst [vmem:[#allocation81_spill] sm:$0xff] %v1608_v45  ;;  %v1630_v45 = vld [vmem:[#allocation2 + $0x348] sm:$0xff] }
 0x1db   :  { %2129 = vst [vmem:[#allocation82_spill] sm:$0xff] %v1610_v58  ;;  %v1632_v58 = vld [vmem:[#allocation2 + $0x350] sm:$0xff] }
 0x1dc   :  { %2130 = vst [vmem:[#allocation83_spill] sm:$0xff] %v1616_v49  ;;  %v1638_v49 = vld [vmem:[#allocation2 + $0x368] sm:$0xff] }
 0x1dd   :  { %2131 = vst [vmem:[#allocation84_spill] sm:$0xff] %v1618_v23  ;;  %v1640_v23 = vld [vmem:[#allocation2 + $0x370] sm:$0xff] }
 0x1de   :  { %2132 = vst [vmem:[#allocation85_spill] sm:$0xff] %v1624_v53  ;;  %v1646_v53 = vld [vmem:[#allocation2 + $0x388] sm:$0xff] }
 0x1df   :  { %2133 = vst [vmem:[#allocation86_spill] sm:$0xff] %v1626_v61  ;;  %v1648_v61 = vld [vmem:[#allocation2 + $0x390] sm:$0xff] }
 0x1e0   :  { %2134 = vst [vmem:[#allocation87_spill] sm:$0xff] %v1632_v58  ;;  %v1654_v58 = vld [vmem:[#allocation2 + $0x3a8] sm:$0xff] }
 0x1e1   :  { %2135 = vst [vmem:[#allocation88_spill] sm:$0xff] %v1634_v44  ;;  %v1656_v44 = vld [vmem:[#allocation2 + $0x3b0] sm:$0xff] }
 0x1e2   :  { %2136 = vst [vmem:[#allocation89_spill] sm:$0xff] %v1640_v23  ;;  %v1662_v23 = vld [vmem:[#allocation2 + $0x3c8] sm:$0xff] }
 0x1e3   :  { %2137 = vst [vmem:[#allocation90_spill] sm:$0xff] %v1642_v20  ;;  %v1664_v20 = vld [vmem:[#allocation2 + $0x3d0] sm:$0xff] }
 0x1e4   :  { %2138 = vst [vmem:[#allocation91_spill] sm:$0xff] %v1648_v61  ;;  %v1670_v61 = vld [vmem:[#allocation2 + $0x3e8] sm:$0xff] }
 0x1e5   :  { %2139 = vst [vmem:[#allocation92_spill] sm:$0xff] %v1650_v12  ;;  %v1672_v12 = vld [vmem:[#allocation2 + $0x3f0] sm:$0xff] }
 0x1e6   :  { %2140 = vst [vmem:[#allocation93_spill] sm:$0xff] %v1656_v44 }
 0x1e7   :  { %2141 = vst [vmem:[#allocation94_spill] sm:$0xff] %v1658_v7 }
 0x1e8   :  { %2142 = vst [vmem:[#allocation95_spill] sm:$0xff] %v1664_v20 }
 0x1e9   :  { %2143 = vst [vmem:[#allocation96_spill] sm:$0xff] %v1666_v2 }
 0x1ea   :  { %2144 = vst [vmem:[#allocation97_spill] sm:$0xff] %v1672_v12 }
 0x1eb   :  { %2145 = vst [vmem:[#allocation98_spill] sm:$0xff] %v1674_v1 }
 0x1ec   :  { %1303 = dma.done.wait [#allocation3 + $0x1], 16384 }
 0x1ed   :  { %1304 = vsyncadd [#allocation3 + $0x1], 4294950912  ;;  %v600_v44 = vld [vmem:[#allocation2 + $0x5e0] sm:$0xff]  ;;  %v601_v36 = vld [vmem:[#allocation2 + $0x5e8] sm:$0xff]  ;;  %vm1201_vm12 = vcmask 7168  }
 0x1ee   :  { %v664_v7 = vld [vmem:[#allocation2 + $0x7e0] sm:$0xff]  ;;  %668 = vmatpush.msra.mxu1 %v600_v44  ;;  %v597_v20 = vld [vmem:[#allocation2 + $0x5c8] sm:$0xff]  ;;  %708 = vmatpush.msra.mxu3 %v601_v36 }
 0x1ef   :  { %688 = vmatpush.msra.mxu2 %v664_v7  ;;  %v596_v10 = vld [vmem:[#allocation2 + $0x5c0] sm:$0xff]  ;;  %v593_v19 = vld [vmem:[#allocation2 + $0x5a8] sm:$0xff] }
 0x1f0   :  { %v660_v24 = vld [vmem:[#allocation2 + $0x7c0] sm:$0xff]  ;;  %669 = vmatpush.msra.mxu1 %v596_v10  ;;  %709 = vmatpush.msra.mxu3 %v597_v20  ;;  %v589_v1 = vld [vmem:[#allocation2 + $0x588] sm:$0xff] }
 0x1f1   :  { %v592_v2 = vld [vmem:[#allocation2 + $0x5a0] sm:$0xff]  ;;  %689 = vmatpush.msra.mxu2 %v660_v24  ;;  %v665_v32 = vld [vmem:[#allocation2 + $0x7e8] sm:$0xff] }
 0x1f2   :  { %v656_v9 = vld [vmem:[#allocation2 + $0x7a0] sm:$0xff]  ;;  %670 = vmatpush.msra.mxu1 %v592_v2  ;;  %710 = vmatpush.msra.mxu3 %v593_v19  ;;  %v661_v7 = vld [vmem:[#allocation2 + $0x7c8] sm:$0xff] }
 0x1f3   :  { %v588_v12 = vld [vmem:[#allocation2 + $0x580] sm:$0xff]  ;;  %690 = vmatpush.msra.mxu2 %v656_v9  ;;  %728 = vmatpush.msrb.mxu0 %v665_v32  ;;  %v585_v36 = vld [vmem:[#allocation2 + $0x568] sm:$0xff] }
 0x1f4   :  { %v652_v14 = vld [vmem:[#allocation2 + $0x780] sm:$0xff]  ;;  %671 = vmatpush.msra.mxu1 %v588_v12  ;;  %v657_v27 = vld [vmem:[#allocation2 + $0x7a8] sm:$0xff]  ;;  %711 = vmatpush.msra.mxu3 %v589_v1 }
 0x1f5   :  { %v584_v13 = vld [vmem:[#allocation2 + $0x560] sm:$0xff]  ;;  %691 = vmatpush.msra.mxu2 %v652_v14  ;;  %729 = vmatpush.msrb.mxu0 %v661_v7  ;;  %v581_v20 = vld [vmem:[#allocation2 + $0x548] sm:$0xff] }
 0x1f6   :  { %v648_v44 = vld [vmem:[#allocation2 + $0x760] sm:$0xff]  ;;  %672 = vmatpush.msra.mxu1 %v584_v13  ;;  %v653_v2 = vld [vmem:[#allocation2 + $0x788] sm:$0xff]  ;;  %712 = vmatpush.msra.mxu3 %v585_v36 }
 0x1f7   :  { %v580_v10 = vld [vmem:[#allocation2 + $0x540] sm:$0xff]  ;;  %692 = vmatpush.msra.mxu2 %v648_v44  ;;  %730 = vmatpush.msrb.mxu0 %v657_v27  ;;  %v577_v19 = vld [vmem:[#allocation2 + $0x528] sm:$0xff] }
 0x1f8   :  { %v644_v24 = vld [vmem:[#allocation2 + $0x740] sm:$0xff]  ;;  %673 = vmatpush.msra.mxu1 %v580_v10  ;;  %v649_v32 = vld [vmem:[#allocation2 + $0x768] sm:$0xff]  ;;  %713 = vmatpush.msra.mxu3 %v581_v20 }
 0x1f9   :  { %v576_v9 = vld [vmem:[#allocation2 + $0x520] sm:$0xff]  ;;  %693 = vmatpush.msra.mxu2 %v644_v24  ;;  %731 = vmatpush.msrb.mxu0 %v653_v2  ;;  %v573_v1 = vld [vmem:[#allocation2 + $0x508] sm:$0xff] }
 0x1fa   :  { %v640_v18 = vld [vmem:[#allocation2 + $0x720] sm:$0xff]  ;;  %674 = vmatpush.msra.mxu1 %v576_v9  ;;  %v645_v7 = vld [vmem:[#allocation2 + $0x748] sm:$0xff]  ;;  %714 = vmatpush.msra.mxu3 %v577_v19 }
 0x1fb   :  { %v572_v12 = vld [vmem:[#allocation2 + $0x500] sm:$0xff]  ;;  %694 = vmatpush.msra.mxu2 %v640_v18  ;;  %732 = vmatpush.msrb.mxu0 %v649_v32  ;;  %v569_v36 = vld [vmem:[#allocation2 + $0x4e8] sm:$0xff] }
 0x1fc   :  { %v636_v14 = vld [vmem:[#allocation2 + $0x700] sm:$0xff]  ;;  %675 = vmatpush.msra.mxu1 %v572_v12  ;;  %v641_v27 = vld [vmem:[#allocation2 + $0x728] sm:$0xff]  ;;  %715 = vmatpush.msra.mxu3 %v573_v1 }
 0x1fd   :  { %v568_v13 = vld [vmem:[#allocation2 + $0x4e0] sm:$0xff]  ;;  %695 = vmatpush.msra.mxu2 %v636_v14  ;;  %733 = vmatpush.msrb.mxu0 %v645_v7  ;;  %v565_v20 = vld [vmem:[#allocation2 + $0x4c8] sm:$0xff] }
 0x1fe   :  { %v632_v44 = vld [vmem:[#allocation2 + $0x6e0] sm:$0xff]  ;;  %676 = vmatpush.msra.mxu1 %v568_v13  ;;  %v637_v2 = vld [vmem:[#allocation2 + $0x708] sm:$0xff]  ;;  %716 = vmatpush.msra.mxu3 %v569_v36 }
 0x1ff   :  { %v564_v10 = vld [vmem:[#allocation2 + $0x4c0] sm:$0xff]  ;;  %696 = vmatpush.msra.mxu2 %v632_v44  ;;  %734 = vmatpush.msrb.mxu0 %v641_v27  ;;  %v561_v19 = vld [vmem:[#allocation2 + $0x4a8] sm:$0xff] }
 0x200   :  { %v628_v24 = vld [vmem:[#allocation2 + $0x6c0] sm:$0xff]  ;;  %677 = vmatpush.msra.mxu1 %v564_v10  ;;  %v633_v32 = vld [vmem:[#allocation2 + $0x6e8] sm:$0xff]  ;;  %717 = vmatpush.msra.mxu3 %v565_v20 }
 0x201   :  { %v560_v18 = vld [vmem:[#allocation2 + $0x4a0] sm:$0xff]  ;;  %697 = vmatpush.msra.mxu2 %v628_v24  ;;  %735 = vmatpush.msrb.mxu0 %v637_v2  ;;  %v557_v1 = vld [vmem:[#allocation2 + $0x488] sm:$0xff] }
 0x202   :  { %v624_v9 = vld [vmem:[#allocation2 + $0x6a0] sm:$0xff]  ;;  %678 = vmatpush.msra.mxu1 %v560_v18  ;;  %v629_v7 = vld [vmem:[#allocation2 + $0x6c8] sm:$0xff]  ;;  %718 = vmatpush.msra.mxu3 %v561_v19 }
 0x203   :  { %v556_v12 = vld [vmem:[#allocation2 + $0x480] sm:$0xff]  ;;  %698 = vmatpush.msra.mxu2 %v624_v9  ;;  %736 = vmatpush.msrb.mxu0 %v633_v32  ;;  %v553_v36 = vld [vmem:[#allocation2 + $0x468] sm:$0xff] }
 0x204   :  { %v620_v14 = vld [vmem:[#allocation2 + $0x680] sm:$0xff]  ;;  %679 = vmatpush.msra.mxu1 %v556_v12  ;;  %v625_v27 = vld [vmem:[#allocation2 + $0x6a8] sm:$0xff]  ;;  %719 = vmatpush.msra.mxu3 %v557_v1 }
 0x205   :  { %v552_v13 = vld [vmem:[#allocation2 + $0x460] sm:$0xff]  ;;  %699 = vmatpush.msra.mxu2 %v620_v14  ;;  %737 = vmatpush.msrb.mxu0 %v629_v7  ;;  %v549_v20 = vld [vmem:[#allocation2 + $0x448] sm:$0xff]  ;;  %v602_v7 = vld [vmem:[#allocation2 + $0x5f0] sm:$0xff] }
 0x206   :  { %v616_v44 = vld [vmem:[#allocation2 + $0x660] sm:$0xff]  ;;  %680 = vmatpush.msra.mxu1 %v552_v13  ;;  %v621_v2 = vld [vmem:[#allocation2 + $0x688] sm:$0xff]  ;;  %720 = vmatpush.msra.mxu3 %v553_v36  ;;  %v666_v13 = vld [vmem:[#allocation2 + $0x7f0] sm:$0xff] }
 0x207   :  { %v548_v10 = vld [vmem:[#allocation2 + $0x440] sm:$0xff]  ;;  %700 = vmatpush.msra.mxu2 %v616_v44  ;;  %738 = vmatpush.msrb.mxu0 %v625_v27  ;;  %v545_v19 = vld [vmem:[#allocation2 + $0x428] sm:$0xff]  ;;  %v603_v44 = vld [vmem:[#allocation2 + $0x5f8] sm:$0xff] }
 0x208   :  { %v612_v24 = vld [vmem:[#allocation2 + $0x640] sm:$0xff]  ;;  %681 = vmatpush.msra.mxu1 %v548_v10  ;;  %v617_v32 = vld [vmem:[#allocation2 + $0x668] sm:$0xff]  ;;  %721 = vmatpush.msra.mxu3 %v549_v20  ;;  %v598_v36 = vld [vmem:[#allocation2 + $0x5d0] sm:$0xff] }
 0x209   :  { %v544_v18 = vld [vmem:[#allocation2 + $0x420] sm:$0xff]  ;;  %701 = vmatpush.msra.mxu2 %v612_v24  ;;  %739 = vmatpush.msrb.mxu0 %v621_v2  ;;  %v541_v1 = vld [vmem:[#allocation2 + $0x408] sm:$0xff]  ;;  %v662_v10 = vld [vmem:[#allocation2 + $0x7d0] sm:$0xff] }
 0x20a   :  { %v608_v9 = vld [vmem:[#allocation2 + $0x620] sm:$0xff]  ;;  %682 = vmatpush.msra.mxu1 %v544_v18  ;;  %722 = vmatpush.msra.mxu3 %v545_v19  ;;  %v613_v27 = vld [vmem:[#allocation2 + $0x648] sm:$0xff]  ;;  %v599_v24 = vld [vmem:[#allocation2 + $0x5d8] sm:$0xff] }
 0x20b   :  { %v540_v12 = vld [vmem:[#allocation2 + $0x400] sm:$0xff]  ;;  %702 = vmatpush.msra.mxu2 %v608_v9  ;;  %740 = vmatpush.msrb.mxu0 %v617_v32  ;;  %v594_v20 = vld [vmem:[#allocation2 + $0x5b0] sm:$0xff]  ;;  %v609_v2 = vld [vmem:[#allocation2 + $0x628] sm:$0xff] }
 0x20c   :  { %v604_v14 = vld [vmem:[#allocation2 + $0x600] sm:$0xff]  ;;  %683 = vmatpush.msra.mxu1 %v540_v12  ;;  %723 = vmatpush.msra.mxu3 %v541_v1  ;;  %v658_v18 = vld [vmem:[#allocation2 + $0x7b0] sm:$0xff]  ;;  %v595_v9 = vld [vmem:[#allocation2 + $0x5b8] sm:$0xff] }
 0x20d   :  { %703 = vmatpush.msra.mxu2 %v604_v14  ;;  %741 = vmatpush.msrb.mxu0 %v613_v27  ;;  %v590_v19 = vld [vmem:[#allocation2 + $0x590] sm:$0xff]  ;;  %v605_v32 = vld [vmem:[#allocation2 + $0x608] sm:$0xff]  ;;  %v591_v14 = vld [vmem:[#allocation2 + $0x598] sm:$0xff] }
 0x20e   :  { %748 = vmatpush.msrb.mxu1 %v602_v7  ;;  %788 = vmatpush.msrb.mxu3 %v603_v44  ;;  %v654_v12 = vld [vmem:[#allocation2 + $0x790] sm:$0xff]  ;;  %v667_v7 = vld [vmem:[#allocation2 + $0x7f8] sm:$0xff] }
 0x20f   :  { %768 = vmatpush.msrb.mxu2 %v666_v13  ;;  %742 = vmatpush.msrb.mxu0 %v609_v2  ;;  %v586_v1 = vld [vmem:[#allocation2 + $0x570] sm:$0xff]  ;;  %v587_v44 = vld [vmem:[#allocation2 + $0x578] sm:$0xff] }
 0x210   :  { %749 = vmatpush.msrb.mxu1 %v598_v36  ;;  %789 = vmatpush.msrb.mxu3 %v599_v24  ;;  %v650_v13 = vld [vmem:[#allocation2 + $0x770] sm:$0xff]  ;;  %v663_v27 = vld [vmem:[#allocation2 + $0x7d8] sm:$0xff] }
 0x211   :  { %769 = vmatpush.msrb.mxu2 %v662_v10  ;;  %743 = vmatpush.msrb.mxu0 %v605_v32  ;;  %v582_v36 = vld [vmem:[#allocation2 + $0x550] sm:$0xff]  ;;  %v583_v24 = vld [vmem:[#allocation2 + $0x558] sm:$0xff] }
 0x212   :  { %750 = vmatpush.msrb.mxu1 %v594_v20  ;;  %790 = vmatpush.msrb.mxu3 %v595_v9  ;;  %v646_v10 = vld [vmem:[#allocation2 + $0x750] sm:$0xff]  ;;  %v659_v2 = vld [vmem:[#allocation2 + $0x7b8] sm:$0xff] }
 0x213   :  { %770 = vmatpush.msrb.mxu2 %v658_v18  ;;  %808 = vmatpush.msra.mxu0 %v667_v7  ;;  %v578_v20 = vld [vmem:[#allocation2 + $0x530] sm:$0xff]  ;;  %v579_v9 = vld [vmem:[#allocation2 + $0x538] sm:$0xff] }
 0x214   :  { %751 = vmatpush.msrb.mxu1 %v590_v19  ;;  %791 = vmatpush.msrb.mxu3 %v591_v14  ;;  %v642_v18 = vld [vmem:[#allocation2 + $0x730] sm:$0xff]  ;;  %v655_v32 = vld [vmem:[#allocation2 + $0x798] sm:$0xff] }
 0x215   :  { %771 = vmatpush.msrb.mxu2 %v654_v12  ;;  %809 = vmatpush.msra.mxu0 %v663_v27  ;;  %v574_v19 = vld [vmem:[#allocation2 + $0x510] sm:$0xff]  ;;  %v575_v14 = vld [vmem:[#allocation2 + $0x518] sm:$0xff] }
 0x216   :  { %752 = vmatpush.msrb.mxu1 %v586_v1  ;;  %792 = vmatpush.msrb.mxu3 %v587_v44  ;;  %v638_v12 = vld [vmem:[#allocation2 + $0x710] sm:$0xff]  ;;  %v651_v7 = vld [vmem:[#allocation2 + $0x778] sm:$0xff] }
 0x217   :  { %772 = vmatpush.msrb.mxu2 %v650_v13  ;;  %810 = vmatpush.msra.mxu0 %v659_v2  ;;  %v570_v1 = vld [vmem:[#allocation2 + $0x4f0] sm:$0xff]  ;;  %v571_v44 = vld [vmem:[#allocation2 + $0x4f8] sm:$0xff] }
 0x218   :  { %753 = vmatpush.msrb.mxu1 %v582_v36  ;;  %793 = vmatpush.msrb.mxu3 %v583_v24  ;;  %v634_v13 = vld [vmem:[#allocation2 + $0x6f0] sm:$0xff]  ;;  %v647_v27 = vld [vmem:[#allocation2 + $0x758] sm:$0xff] }
 0x219   :  { %773 = vmatpush.msrb.mxu2 %v646_v10  ;;  %811 = vmatpush.msra.mxu0 %v655_v32  ;;  %v566_v36 = vld [vmem:[#allocation2 + $0x4d0] sm:$0xff]  ;;  %v567_v24 = vld [vmem:[#allocation2 + $0x4d8] sm:$0xff] }
 0x21a   :  { %754 = vmatpush.msrb.mxu1 %v578_v20  ;;  %794 = vmatpush.msrb.mxu3 %v579_v9  ;;  %v630_v10 = vld [vmem:[#allocation2 + $0x6d0] sm:$0xff]  ;;  %v643_v2 = vld [vmem:[#allocation2 + $0x738] sm:$0xff] }
 0x21b   :  { %774 = vmatpush.msrb.mxu2 %v642_v18  ;;  %812 = vmatpush.msra.mxu0 %v651_v7  ;;  %v562_v20 = vld [vmem:[#allocation2 + $0x4b0] sm:$0xff]  ;;  %v563_v9 = vld [vmem:[#allocation2 + $0x4b8] sm:$0xff] }
 0x21c   :  { %755 = vmatpush.msrb.mxu1 %v574_v19  ;;  %795 = vmatpush.msrb.mxu3 %v575_v14  ;;  %v626_v18 = vld [vmem:[#allocation2 + $0x6b0] sm:$0xff]  ;;  %v639_v32 = vld [vmem:[#allocation2 + $0x718] sm:$0xff] }
 0x21d   :  { %775 = vmatpush.msrb.mxu2 %v638_v12  ;;  %813 = vmatpush.msra.mxu0 %v647_v27  ;;  %v558_v19 = vld [vmem:[#allocation2 + $0x490] sm:$0xff]  ;;  %v559_v14 = vld [vmem:[#allocation2 + $0x498] sm:$0xff] }
 0x21e   :  { %756 = vmatpush.msrb.mxu1 %v570_v1  ;;  %796 = vmatpush.msrb.mxu3 %v571_v44  ;;  %v622_v12 = vld [vmem:[#allocation2 + $0x690] sm:$0xff]  ;;  %v635_v7 = vld [vmem:[#allocation2 + $0x6f8] sm:$0xff] }
 0x21f   :  { %776 = vmatpush.msrb.mxu2 %v634_v13  ;;  %814 = vmatpush.msra.mxu0 %v643_v2  ;;  %v554_v1 = vld [vmem:[#allocation2 + $0x470] sm:$0xff]  ;;  %v555_v44 = vld [vmem:[#allocation2 + $0x478] sm:$0xff] }
 0x220   :  { %757 = vmatpush.msrb.mxu1 %v566_v36  ;;  %797 = vmatpush.msrb.mxu3 %v567_v24  ;;  %v618_v13 = vld [vmem:[#allocation2 + $0x670] sm:$0xff]  ;;  %v631_v27 = vld [vmem:[#allocation2 + $0x6d8] sm:$0xff] }
 0x221   :  { %777 = vmatpush.msrb.mxu2 %v630_v10  ;;  %815 = vmatpush.msra.mxu0 %v639_v32  ;;  %v550_v36 = vld [vmem:[#allocation2 + $0x450] sm:$0xff]  ;;  %v551_v24 = vld [vmem:[#allocation2 + $0x458] sm:$0xff] }
 0x222   :  { %758 = vmatpush.msrb.mxu1 %v562_v20  ;;  %798 = vmatpush.msrb.mxu3 %v563_v9  ;;  %v614_v10 = vld [vmem:[#allocation2 + $0x650] sm:$0xff]  ;;  %v627_v2 = vld [vmem:[#allocation2 + $0x6b8] sm:$0xff] }
 0x223   :  { %778 = vmatpush.msrb.mxu2 %v626_v18  ;;  %816 = vmatpush.msra.mxu0 %v635_v7  ;;  %v546_v20 = vld [vmem:[#allocation2 + $0x430] sm:$0xff]  ;;  %v547_v9 = vld [vmem:[#allocation2 + $0x438] sm:$0xff] }
 0x224   :  { %759 = vmatpush.msrb.mxu1 %v558_v19  ;;  %799 = vmatpush.msrb.mxu3 %v559_v14  ;;  %v610_v18 = vld [vmem:[#allocation2 + $0x630] sm:$0xff]  ;;  %v623_v14 = vld [vmem:[#allocation2 + $0x698] sm:$0xff] }
 0x225   :  { %779 = vmatpush.msrb.mxu2 %v622_v12  ;;  %817 = vmatpush.msra.mxu0 %v631_v27  ;;  %v542_v19 = vld [vmem:[#allocation2 + $0x410] sm:$0xff]  ;;  %v543_v12 = vld [vmem:[#allocation2 + $0x418] sm:$0xff]  ;;  %v2195_v27 = vld [vmem:[#allocation81_spill] sm:$0xff] }
 0x226   :  { %760 = vmatpush.msrb.mxu1 %v554_v1  ;;  %800 = vmatpush.msrb.mxu3 %v555_v44  ;;  %v606_v32 = vld [vmem:[#allocation2 + $0x610] sm:$0xff]  ;;  %v619_v1 = vld [vmem:[#allocation2 + $0x678] sm:$0xff]  ;;  %v2193_v44 = vld [vmem:[#allocation92_spill] sm:$0xff] }
 0x227   :  { %780 = vmatpush.msrb.mxu2 %v618_v13  ;;  %818 = vmatpush.msra.mxu0 %v627_v2  ;;  %v615_v7 = vld [vmem:[#allocation2 + $0x658] sm:$0xff]  ;;  %v2199_v2 = vld [vmem:[#allocation78_spill] sm:$0xff] }
 0x228   :  { %761 = vmatpush.msrb.mxu1 %v550_v36  ;;  %801 = vmatpush.msrb.mxu3 %v551_v24  ;;  %v611_v13 = vld [vmem:[#allocation2 + $0x638] sm:$0xff]  ;;  %v2194_v36 = vld [vmem:[#allocation38_spill] sm:$0xff] }
 0x229   :  { %781 = vmatpush.msrb.mxu2 %v614_v10  ;;  %819 = vmatpush.msra.mxu0 %v623_v14  ;;  %v2196_v10 = vld [vmem:[#allocation39_spill] sm:$0xff]  ;;  %v2197_v24 = vld [vmem:[#allocation90_spill] sm:$0xff] }
 0x22a   :  { %762 = vmatpush.msrb.mxu1 %v546_v20  ;;  %802 = vmatpush.msrb.mxu3 %v547_v9  ;;  %v2198_v20 = vld [vmem:[#allocation36_spill] sm:$0xff]  ;;  %v2205_v14 = vld [vmem:[#allocation86_spill] sm:$0xff] }
 0x22b   :  { %782 = vmatpush.msrb.mxu2 %v610_v18  ;;  %684 = vmatmul.f32.vlgmr.msra.gmra.mxu1 %v1356_v3  ;;  %v2200_v18 = vld [vmem:[#allocation37_spill] sm:$0xff]  ;;  %v2201_v9 = vld [vmem:[#allocation88_spill] sm:$0xff] }
 0x22c   :  { %704 = vmatmul.f32.vlgmr.msra.gmra.mxu2 %v1361_v4  ;;  %763 = vmatpush.msrb.mxu1 %v542_v19  ;;  %v2202_v19 = vld [vmem:[#allocation34_spill] sm:$0xff] }
 0x22d   :  { %783 = vmatpush.msrb.mxu2 %v606_v32  ;;  %803 = vmatpush.msrb.mxu3 %v543_v12  ;;  %v2203_v32 = vld [vmem:[#allocation75_spill] sm:$0xff] }
 0x22e   :  { %724 = vmatmul.f32.vlgmr.msra.gmra.mxu3 %v1356_v3  ;;  %828 = vmatpush.msra.mxu1 %v1540_v6  ;;  %v607_v6 = vld [vmem:[#allocation2 + $0x618] sm:$0xff] }
 0x22f   :  { %848 = vmatpush.msra.mxu2 %v1668_v16  ;;  %868 = vmatpush.msra.mxu3 %v1542_v5  ;;  %v2149_v5 = vld [vmem:[#allocation64_spill] sm:$0xff]  ;;  %v2152_v16 = vld [vmem:[#allocation21_spill] sm:$0xff]  ;;  %v2204_v12 = vld [vmem:[#allocation35_spill] sm:$0xff] }
 0x230   :  { %820 = vmatpush.msra.mxu0 %v619_v1  ;;  %829 = vmatpush.msra.mxu1 %v1532_v63  ;;  %v2192_v63 = vld [vmem:[#allocation41_spill] sm:$0xff]  ;;  %v2206_v1 = vld [vmem:[#allocation32_spill] sm:$0xff] }
 0x231   :  { %849 = vmatpush.msra.mxu2 %v1660_v28  ;;  %869 = vmatpush.msra.mxu3 %v1534_v0  ;;  %v2148_v0 = vld [vmem:[#allocation25_spill] sm:$0xff]  ;;  %v2160_v28 = vld [vmem:[#allocation12_spill] sm:$0xff] }
 0x232   :  { %821 = vmatpush.msra.mxu0 %v615_v7  ;;  %830 = vmatpush.msra.mxu1 %v1524_v59  ;;  %v2188_v59 = vld [vmem:[#allocation43_spill] sm:$0xff]  ;;  %v2207_v7 = vld [vmem:[#allocation72_spill] sm:$0xff] }
 0x233   :  { %850 = vmatpush.msra.mxu2 %v1652_v8  ;;  %870 = vmatpush.msra.mxu3 %v1526_v60  ;;  %v2146_v8 = vld [vmem:[#allocation29_spill] sm:$0xff]  ;;  %v2189_v60 = vld [vmem:[#allocation94_spill] sm:$0xff] }
 0x234   :  { %822 = vmatpush.msra.mxu0 %v611_v13  ;;  %831 = vmatpush.msra.mxu1 %v1516_v55  ;;  %v2184_v55 = vld [vmem:[#allocation45_spill] sm:$0xff] }
 0x235   :  { %851 = vmatpush.msra.mxu2 %v1644_v11  ;;  %871 = vmatpush.msra.mxu3 %v1518_v56  ;;  %v2150_v11 = vld [vmem:[#allocation26_spill] sm:$0xff]  ;;  %v2185_v56 = vld [vmem:[#allocation96_spill] sm:$0xff]  ;;  %v2208_v13 = vld [vmem:[#allocation33_spill] sm:$0xff] }
 0x236   :  { %823 = vmatpush.msra.mxu0 %v607_v6  ;;  %832 = vmatpush.msra.mxu1 %v1508_v51  ;;  %v2180_v51 = vld [vmem:[#allocation47_spill] sm:$0xff]  ;;  %v2209_v6 = vld [vmem:[#allocation84_spill] sm:$0xff] }
 0x237   :  { %744 = vmatmul.f32.vlgmr.msrb.gmra.mxu0 %v1361_v4  ;;  %852 = vmatpush.msra.mxu2 %v1636_v39  ;;  %v2147_v39 = vld [vmem:[#allocation80_spill] sm:$0xff] }
 0x238   :  { %872 = vmatpush.msra.mxu3 %v1510_v52  ;;  %888 = vmatpush.msrb.mxu0 %v1670_v61  ;;  %v2181_v52 = vld [vmem:[#allocation98_spill] sm:$0xff]  ;;  %v2190_v61 = vld [vmem:[#allocation40_spill] sm:$0xff] }
 0x239   :  { %833 = vmatpush.msra.mxu1 %v1500_v47  ;;  %853 = vmatpush.msra.mxu2 %v1628_v31  ;;  %v2163_v31 = vld [vmem:[#allocation97_spill] sm:$0xff] }
 0x23a   :  { %873 = vmatpush.msra.mxu3 %v1502_v48  ;;  %889 = vmatpush.msrb.mxu0 %v1662_v23  ;;  %v2157_v23 = vld [vmem:[#allocation56_spill] sm:$0xff]  ;;  %v2176_v47 = vld [vmem:[#allocation49_spill] sm:$0xff] }
 0x23b   :  { %834 = vmatpush.msra.mxu1 %v1492_v42  ;;  %854 = vmatpush.msra.mxu2 %v1620_v62  ;;  %v2172_v42 = vld [vmem:[#allocation51_spill] sm:$0xff]  ;;  %v2177_v48 = vld [vmem:[#allocation57_spill] sm:$0xff] }
 0x23c   :  { %874 = vmatpush.msra.mxu3 %v1494_v43  ;;  %890 = vmatpush.msrb.mxu0 %v1654_v58  ;;  %v2173_v43 = vld [vmem:[#allocation61_spill] sm:$0xff]  ;;  %v2191_v62 = vld [vmem:[#allocation83_spill] sm:$0xff] }
 0x23d   :  { %835 = vmatpush.msra.mxu1 %v1484_v37  ;;  %855 = vmatpush.msra.mxu2 %v1612_v57  ;;  %v2167_v37 = vld [vmem:[#allocation95_spill] sm:$0xff]  ;;  %v2186_v57 = vld [vmem:[#allocation42_spill] sm:$0xff]  ;;  %v2187_v58 = vld [vmem:[#allocation85_spill] sm:$0xff] }
 0x23e   :  { %875 = vmatpush.msra.mxu3 %v1486_v38  ;;  %891 = vmatpush.msrb.mxu0 %v1646_v53  ;;  %v2168_v38 = vld [vmem:[#allocation53_spill] sm:$0xff]  ;;  %v2182_v53 = vld [vmem:[#allocation44_spill] sm:$0xff] }
 0x23f   :  { %836 = vmatpush.msra.mxu1 %v1476_v33  ;;  %856 = vmatpush.msra.mxu2 %v1604_v15  ;;  %v2151_v15 = vld [vmem:[#allocation77_spill] sm:$0xff]  ;;  %v2164_v33 = vld [vmem:[#allocation55_spill] sm:$0xff] }
 0x240   :  { %876 = vmatpush.msra.mxu3 %v1478_v34  ;;  %892 = vmatpush.msrb.mxu0 %v1638_v49  ;;  %v2165_v34 = vld [vmem:[#allocation68_spill] sm:$0xff]  ;;  %v2178_v49 = vld [vmem:[#allocation46_spill] sm:$0xff] }
 0x241   :  { %837 = vmatpush.msra.mxu1 %v1468_v29  ;;  %857 = vmatpush.msra.mxu2 %v1596_v54  ;;  %v2161_v29 = vld [vmem:[#allocation13_spill] sm:$0xff]  ;;  %v2183_v54 = vld [vmem:[#allocation87_spill] sm:$0xff] }
 0x242   :  { %877 = vmatpush.msra.mxu3 %v1470_v30  ;;  %893 = vmatpush.msrb.mxu0 %v1630_v45  ;;  %v2162_v30 = vld [vmem:[#allocation54_spill] sm:$0xff]  ;;  %v2174_v45 = vld [vmem:[#allocation48_spill] sm:$0xff] }
 0x243   :  { %838 = vmatpush.msra.mxu1 %v1460_v25  ;;  %858 = vmatpush.msra.mxu2 %v1588_v50  ;;  %v2158_v25 = vld [vmem:[#allocation18_spill] sm:$0xff]  ;;  %v2179_v50 = vld [vmem:[#allocation89_spill] sm:$0xff] }
 0x244   :  { %878 = vmatpush.msra.mxu3 %v1462_v26  ;;  %894 = vmatpush.msrb.mxu0 %v1622_v40  ;;  %v2159_v26 = vld [vmem:[#allocation71_spill] sm:$0xff]  ;;  %v2169_v40 = vld [vmem:[#allocation65_spill] sm:$0xff] }
 0x245   :  { %839 = vmatpush.msra.mxu1 %v1452_v21  ;;  %859 = vmatpush.msra.mxu2 %v1580_v46  ;;  %v2153_v21 = vld [vmem:[#allocation60_spill] sm:$0xff]  ;;  %v2175_v46 = vld [vmem:[#allocation91_spill] sm:$0xff] }
 0x246   :  { %879 = vmatpush.msra.mxu3 %v1454_v22  ;;  %895 = vmatpush.msrb.mxu0 %v1614_v35  ;;  %v2156_v22 = vld [vmem:[#allocation17_spill] sm:$0xff]  ;;  %v2166_v35 = vld [vmem:[#allocation52_spill] sm:$0xff] }
 0x247   :  { %764 = vmatmul.f32.vlgmr.msrb.gmra.mxu1 %v1356_v3  ;;  %784 = vmatmul.f32.vlgmr.msrb.gmra.mxu2 %v1361_v4 }
 0x248   :  { %804 = vmatmul.f32.vlgmr.msrb.gmra.mxu3 %v1356_v3  ;;  %840 = vmatpush.msra.mxu1 %v1444_v17  ;;  %v2154_v3 = vld [vmem:[#allocation22_spill] sm:$0xff] }
 0x249   :  { %860 = vmatpush.msra.mxu2 %v1572_v41  ;;  %880 = vmatpush.msra.mxu3 %v2146_v8  ;;  %v2155_v17 = vld [vmem:[#allocation74_spill] sm:$0xff]  ;;  %v2171_v41 = vld [vmem:[#allocation93_spill] sm:$0xff] }
 0x24a   :  { %896 = vmatpush.msrb.mxu0 %v2147_v39  ;;  %841 = vmatpush.msra.mxu1 %v2148_v0  ;;  %v2210_v8 = vld [vmem:[#allocation30_spill] sm:$0xff]  ;;  %v2211_v39 = vld [vmem:[#allocation69_spill] sm:$0xff]  ;;  %v2212_v0 = vld [vmem:[#allocation31_spill] sm:$0xff] }
 0x24b   :  { %861 = vmatpush.msra.mxu2 %v2149_v5  ;;  %881 = vmatpush.msra.mxu3 %v2150_v11  ;;  %v2213_v5 = vld [vmem:[#allocation82_spill] sm:$0xff]  ;;  %v2214_v11 = vld [vmem:[#allocation27_spill] sm:$0xff] }
 0x24c   :  { %897 = vmatpush.msrb.mxu0 %v2151_v15  ;;  %842 = vmatpush.msra.mxu1 %v2152_v16  ;;  %v2215_v15 = vld [vmem:[#allocation66_spill] sm:$0xff]  ;;  %v2216_v16 = vld [vmem:[#allocation28_spill] sm:$0xff] }
 0x24d   :  { %862 = vmatpush.msra.mxu2 %v2153_v21  ;;  %882 = vmatpush.msra.mxu3 %v2154_v3  ;;  %v2217_v21 = vld [vmem:[#allocation79_spill] sm:$0xff] }
 0x24e   :  { %898 = vmatpush.msrb.mxu0 %v2155_v17  ;;  %843 = vmatpush.msra.mxu1 %v2156_v22  ;;  %v2218_v3 = vld [vmem:[#allocation23_spill] sm:$0xff]  ;;  %v2219_v17 = vld [vmem:[#allocation62_spill] sm:$0xff]  ;;  %v2220_v22 = vld [vmem:[#allocation24_spill] sm:$0xff] }
 0x24f   :  { %863 = vmatpush.msra.mxu2 %v2157_v23  ;;  %883 = vmatpush.msra.mxu3 %v2158_v25  ;;  %v2221_v23 = vld [vmem:[#allocation76_spill] sm:$0xff]  ;;  %v2222_v25 = vld [vmem:[#allocation19_spill] sm:$0xff] }
 0x250   :  { %899 = vmatpush.msrb.mxu0 %v2159_v26  ;;  %844 = vmatmul.f32.vlgmr.msra.gmra.mxu1 %v2160_v28  ;;  %v2223_v26 = vld [vmem:[#allocation58_spill] sm:$0xff] }
 0x251   :  { %824 = vmatmul.f32.vlgmr.msra.gmra.mxu0 %v1361_v4  ;;  %864 = vmatmul.f32.vlgmr.msra.gmra.mxu2 %v2161_v29  ;;  %v2170_v4 = vld [vmem:[#allocation50_spill] sm:$0xff] }
 0x252   :  { %884 = vmatmul.f32.vlgmr.msra.gmra.mxu3 %v2160_v28  ;;  %908 = vmatpush.msrb.mxu1 %v2162_v30  ;;  %v2224_v30 = vld [vmem:[#allocation20_spill] sm:$0xff] }
 0x253   :  { %928 = vmatpush.msrb.mxu2 %v2163_v31  ;;  %948 = vmatpush.msrb.mxu3 %v2164_v33  ;;  %v2225_v31 = vld [vmem:[#allocation73_spill] sm:$0xff]  ;;  %v2226_v33 = vld [vmem:[#allocation70_spill] sm:$0xff] }
 0x254   :  { %900 = vmatpush.msrb.mxu0 %v2165_v34  ;;  %909 = vmatpush.msrb.mxu1 %v2166_v35  ;;  %v2227_v34 = vld [vmem:[#allocation67_spill] sm:$0xff] }
 0x255   :  { %929 = vmatpush.msrb.mxu2 %v2167_v37  ;;  %949 = vmatpush.msrb.mxu3 %v2168_v38  ;;  %v2228_v35 = vld [vmem:[#allocation63_spill] sm:$0xff] }
 0x256   :  { %901 = vmatpush.msrb.mxu0 %v2169_v40  ;;  %910 = vmatpush.msrb.mxu1 %v2170_v4  ;;  %v2229_v37 = vld [vmem:[#allocation59_spill] sm:$0xff]  ;;  %v1051_v40 = vld [vmem:[%s2049_s4 + $0x70] sm:$0xff] }
 0x257   :  { %930 = vmatpush.msrb.mxu2 %v2171_v41  ;;  %950 = vmatpush.msrb.mxu3 %v2172_v42  ;;  %v1052_v38 = vld [vmem:[%s2049_s4 + $0x78] sm:$0xff]  ;;  %v1067_v4 = vld [vmem:[%s2049_s4 + $0xf0] sm:$0xff]  ;;  %v1066_v41 = vld [vmem:[%s2049_s4 + $0xe8] sm:$0xff] }
 0x258   :  { %902 = vmatpush.msrb.mxu0 %v2173_v43  ;;  %911 = vmatpush.msrb.mxu1 %v2174_v45  ;;  %v1049_v42 = vld [vmem:[%s2049_s4 + $0x60] sm:$0xff]  ;;  %v1048_v43 = vld [vmem:[%s2049_s4 + $0x58] sm:$0xff] }
 0x259   :  { %931 = vmatpush.msrb.mxu2 %v2175_v46  ;;  %951 = vmatpush.msrb.mxu3 %v2176_v47  ;;  %v1065_v45 = vld [vmem:[%s2049_s4 + $0xe0] sm:$0xff]  ;;  %v1047_v46 = vld [vmem:[%s2049_s4 + $0x50] sm:$0xff]  ;;  %v1064_v47 = vld [vmem:[%s2049_s4 + $0xd8] sm:$0xff] }
 0x25a   :  { %903 = vmatpush.msrb.mxu0 %v2177_v48  ;;  %912 = vmatpush.msrb.mxu1 %v2178_v49  ;;  %v1046_v48 = vld [vmem:[%s2049_s4 + $0x48] sm:$0xff]  ;;  %v1063_v49 = vld [vmem:[%s2049_s4 + $0xd0] sm:$0xff] }
 0x25b   :  { %904 = vmatmul.f32.vlgmr.msrb.gmra.mxu0 %v2161_v29  ;;  %932 = vmatpush.msrb.mxu2 %v2179_v50  ;;  %v1045_v50 = vld [vmem:[%s2049_s4 + $0x40] sm:$0xff] }
 0x25c   :  { %952 = vmatpush.msrb.mxu3 %v2180_v51  ;;  %968 = vmatpush.msra.mxu0 %v2181_v52  ;;  %v1062_v51 = vld [vmem:[%s2049_s4 + $0xc8] sm:$0xff]  ;;  %v1044_v52 = vld [vmem:[%s2049_s4 + $0x38] sm:$0xff] }
 0x25d   :  { %913 = vmatpush.msrb.mxu1 %v2182_v53  ;;  %933 = vmatpush.msrb.mxu2 %v2183_v54  ;;  %v1061_v53 = vld [vmem:[%s2049_s4 + $0xc0] sm:$0xff]  ;;  %v1043_v54 = vld [vmem:[%s2049_s4 + $0x30] sm:$0xff] }
 0x25e   :  { %953 = vmatpush.msrb.mxu3 %v2184_v55  ;;  %969 = vmatpush.msra.mxu0 %v2185_v56  ;;  %v1060_v55 = vld [vmem:[%s2049_s4 + $0xb8] sm:$0xff]  ;;  %v1042_v56 = vld [vmem:[%s2049_s4 + $0x28] sm:$0xff] }
 0x25f   :  { %914 = vmatpush.msrb.mxu1 %v2186_v57  ;;  %934 = vmatpush.msrb.mxu2 %v2187_v58  ;;  %v1059_v57 = vld [vmem:[%s2049_s4 + $0xb0] sm:$0xff]  ;;  %v1041_v58 = vld [vmem:[%s2049_s4 + $0x20] sm:$0xff] }
 0x260   :  { %954 = vmatpush.msrb.mxu3 %v2188_v59  ;;  %970 = vmatpush.msra.mxu0 %v2189_v60  ;;  %v1058_v59 = vld [vmem:[%s2049_s4 + $0xa8] sm:$0xff]  ;;  %v1040_v60 = vld [vmem:[%s2049_s4 + $0x18] sm:$0xff] }
 0x261   :  { %915 = vmatpush.msrb.mxu1 %v2190_v61  ;;  %935 = vmatpush.msrb.mxu2 %v2191_v62  ;;  %v1057_v61 = vld [vmem:[%s2049_s4 + $0xa0] sm:$0xff]  ;;  %v1039_v62 = vld [vmem:[%s2049_s4 + $0x10] sm:$0xff] }
 0x262   :  { %955 = vmatpush.msrb.mxu3 %v2192_v63  ;;  %971 = vmatpush.msra.mxu0 %v2193_v44  ;;  %v1056_v63 = vld [vmem:[%s2049_s4 + $0x98] sm:$0xff]  ;;  %v1038_v44 = vld [vmem:[%s2049_s4 + $0x8] sm:$0xff] }
 0x263   :  { %916 = vmatpush.msrb.mxu1 %v2194_v36  ;;  %936 = vmatpush.msrb.mxu2 %v2195_v27  ;;  %v1055_v36 = vld [vmem:[%s2049_s4 + $0x90] sm:$0xff] }
 0x264   :  { %956 = vmatpush.msrb.mxu3 %v2196_v10  ;;  %972 = vmatpush.msra.mxu0 %v2197_v24  ;;  %v1037_v10 = vld [vmem:[%s2049_s4] sm:$0xff]  ;;  %v1054_v24 = vld [vmem:[%s2049_s4 + $0x88] sm:$0xff] }
 0x265   :  { %917 = vmatpush.msrb.mxu1 %v2198_v20  ;;  %937 = vmatpush.msrb.mxu2 %v2199_v2  ;;  %v1084_v20 = vld [vmem:[%s2049_s4 + $0x178] sm:$0xff]  ;;  %v1053_v2 = vld [vmem:[%s2049_s4 + $0x80] sm:$0xff] }
 0x266   :  { %957 = vmatpush.msrb.mxu3 %v2200_v18  ;;  %973 = vmatpush.msra.mxu0 %v2201_v9  ;;  %v1083_v9 = vld [vmem:[%s2049_s4 + $0x170] sm:$0xff] }
 0x267   :  { %918 = vmatpush.msrb.mxu1 %v2202_v19  ;;  %938 = vmatpush.msrb.mxu2 %v2203_v32  ;;  %v1100_v19 = vld [vmem:[%s2049_s4 + $0x1f8] sm:$0xff]  ;;  %v1082_v32 = vld [vmem:[%s2049_s4 + $0x168] sm:$0xff] }
 0x268   :  { %958 = vmatpush.msrb.mxu3 %v2204_v12  ;;  %974 = vmatpush.msra.mxu0 %v2205_v14  ;;  %v1099_v14 = vld [vmem:[%s2049_s4 + $0x1f0] sm:$0xff] }
 0x269   :  { %919 = vmatpush.msrb.mxu1 %v2206_v1  ;;  %939 = vmatpush.msrb.mxu2 %v2207_v7  ;;  %v1081_v1 = vld [vmem:[%s2049_s4 + $0x160] sm:$0xff]  ;;  %v1098_v7 = vld [vmem:[%s2049_s4 + $0x1e8] sm:$0xff] }
 0x26a   :  { %959 = vmatpush.msrb.mxu3 %v2208_v13  ;;  %975 = vmatpush.msra.mxu0 %v2209_v6 }
 0x26b   :  { %920 = vmatpush.msrb.mxu1 %v2210_v8  ;;  %940 = vmatpush.msrb.mxu2 %v2211_v39  ;;  %v1080_v8 = vld [vmem:[%s2049_s4 + $0x158] sm:$0xff]  ;;  %v1097_v39 = vld [vmem:[%s2049_s4 + $0x1e0] sm:$0xff] }
 0x26c   :  { %960 = vmatpush.msrb.mxu3 %v2212_v0  ;;  %976 = vmatpush.msra.mxu0 %v2213_v5  ;;  %v1079_v0 = vld [vmem:[%s2049_s4 + $0x150] sm:$0xff]  ;;  %v1096_v5 = vld [vmem:[%s2049_s4 + $0x1d8] sm:$0xff] }
 0x26d   :  { %921 = vmatpush.msrb.mxu1 %v2214_v11  ;;  %941 = vmatpush.msrb.mxu2 %v2215_v15  ;;  %v1078_v15 = vld [vmem:[%s2049_s4 + $0x148] sm:$0xff] }
 0x26e   :  { %961 = vmatpush.msrb.mxu3 %v2216_v16  ;;  %977 = vmatpush.msra.mxu0 %v2217_v21  ;;  %v2230_v21 = vld [vmem:[#allocation15_spill] sm:$0xff] }
 0x26f   :  { %922 = vmatpush.msrb.mxu1 %v2218_v3  ;;  %942 = vmatpush.msrb.mxu2 %v2219_v17  ;;  %v989_v3 = vperm.slane %v2230_v21, 0  ;;  %v1095_v17 = vld [vmem:[%s2049_s4 + $0x1d0] sm:$0xff] }
 0x270   :  { %962 = vmatpush.msrb.mxu3 %v2220_v22  ;;  %978 = vmatpush.msra.mxu0 %v2221_v23  ;;  %v1077_v22 = vld [vmem:[%s2049_s4 + $0x140] sm:$0xff]  ;;  %v1094_v23 = vld [vmem:[%s2049_s4 + $0x1c8] sm:$0xff] }
 0x271   :  { %923 = vmatpush.msrb.mxu1 %v2222_v25  ;;  %943 = vmatpush.msrb.mxu2 %v2223_v26  ;;  %v997_v26 = vperm.slane %v989_v3, 0 }
 0x272   :  { %963 = vmatpush.msrb.mxu3 %v2224_v30  ;;  %979 = vmatpush.msra.mxu0 %v2225_v31  ;;  %v990_v30 = vperm.slane %v2230_v21, 2 }
 0x273   :  { %924 = vmatmul.f32.vlgmr.msrb.gmra.mxu1 %v2160_v28  ;;  %944 = vmatmul.f32.vlgmr.msrb.gmra.mxu2 %v2161_v29 }
 0x274   :  { %964 = vmatmul.f32.vlgmr.msrb.gmra.mxu3 %v2160_v28  ;;  %980 = vmatpush.msra.mxu0 %v2226_v33  ;;  %v1068_v28 = vld [vmem:[%s2049_s4 + $0xf8] sm:$0xff] }
 0x275   :  { %1103 = vmatpush.msra.mxu1 %v1052_v38  ;;  %1123 = vmatpush.msra.mxu2 %v1068_v28  ;;  %v1075_v38 = vld [vmem:[%s2049_s4 + $0x130] sm:$0xff] }
 0x276   :  { %981 = vmatpush.msra.mxu0 %v2227_v34  ;;  %1143 = vmatpush.msra.mxu3 %v1084_v20  ;;  %v1009_v34 = vperm.slane %v2230_v21, 1  ;;  %v1087_v20 = vld [vmem:[%s2049_s4 + $0x190] sm:$0xff] }
 0x277   :  { %1104 = vmatpush.msra.mxu1 %v1051_v40  ;;  %1124 = vmatpush.msra.mxu2 %v1067_v4  ;;  %v1092_v40 = vld [vmem:[%s2049_s4 + $0x1b8] sm:$0xff]  ;;  %v2231_v4 = vld [vmem:[#allocation14_spill] sm:$0xff] }
 0x278   :  { %982 = vmatpush.msra.mxu0 %v2228_v35  ;;  %1144 = vmatpush.msra.mxu3 %v1083_v9  ;;  %v1076_v35 = vld [vmem:[%s2049_s4 + $0x138] sm:$0xff] }
 0x279   :  { %1125 = vmatpush.msra.mxu2 %v1066_v41  ;;  %v998_v41 = vperm.slane %v990_v30, 0 }
 0x27a   :  { %983 = vmatpush.msra.mxu0 %v2229_v37  ;;  %1145 = vmatpush.msra.mxu3 %v1082_v32  ;;  %v1093_v37 = vld [vmem:[%s2049_s4 + $0x1c0] sm:$0xff] }
 0x27b   :  { %984 = vmatmul.f32.vlgmr.msra.gmra.mxu0 %v2161_v29  ;;  %v1050_v29 = vld [vmem:[%s2049_s4 + $0x68] sm:$0xff]  ;;  %1126 = vmatpush.msra.mxu2 %v1065_v45 }
 0x27c   :  { %1105 = vmatpush.msra.mxu1 %v1050_v29  ;;  %1163 = vmatpush.msrb.mxu0 %v1100_v19  ;;  %v1001_v29 = vmul.f32 %v997_v26, %v2231_v4  ;;  %v1085_v19 = vld [vmem:[%s2049_s4 + $0x180] sm:$0xff] }
 0x27d   :  { %1127 = vmatpush.msra.mxu2 %v1064_v47  ;;  %1146 = vmatpush.msra.mxu3 %v1081_v1 }
 0x27e   :  { %1106 = vmatpush.msra.mxu1 %v1049_v42  ;;  %1164 = vmatpush.msrb.mxu0 %v1099_v14  ;;  %v1074_v42 = vld [vmem:[%s2049_s4 + $0x128] sm:$0xff]  ;;  %v992_v14 = vperm.slane %v2230_v21, 6 }
 0x27f   :  { %1128 = vmatpush.msra.mxu2 %v1063_v49  ;;  %1147 = vmatpush.msra.mxu3 %v1080_v8  ;;  %v1011_v8 = vperm.slane %v2230_v21, 5 }
 0x280   :  { %1107 = vmatpush.msra.mxu1 %v1048_v43  ;;  %1165 = vmatpush.msrb.mxu0 %v1098_v7  ;;  %v1091_v43 = vld [vmem:[%s2049_s4 + $0x1b0] sm:$0xff] }
 0x281   :  { %1129 = vmatpush.msra.mxu2 %v1062_v51  ;;  %1148 = vmatpush.msra.mxu3 %v1079_v0 }
 0x282   :  { %1108 = vmatpush.msra.mxu1 %v1047_v46  ;;  %1166 = vmatpush.msrb.mxu0 %v1097_v39  ;;  %v1000_v39 = vperm.slane %v992_v14, 0 }
 0x283   :  { %1130 = vmatpush.msra.mxu2 %v1061_v53  ;;  %1149 = vmatpush.msra.mxu3 %v1078_v15  ;;  %v1002_v53 = vmul.f32 %v998_v41, %v2231_v4 }
 0x284   :  { %1109 = vmatpush.msra.mxu1 %v1046_v48  ;;  %1167 = vmatpush.msrb.mxu0 %v1096_v5  ;;  %v1017_v48 = vperm.slane %v1009_v34, 1 }
 0x285   :  { %1131 = vmatpush.msra.mxu2 %v1060_v55  ;;  %1150 = vmatpush.msra.mxu3 %v1077_v22  ;;  %v1090_v55 = vld [vmem:[%s2049_s4 + $0x1a8] sm:$0xff] }
 0x286   :  { %1110 = vmatpush.msra.mxu1 %v1045_v50  ;;  %1168 = vmatpush.msrb.mxu0 %v1095_v17  ;;  %v1010_v50 = vperm.slane %v2230_v21, 3  ;;  %v1012_v17 = vperm.slane %v2230_v21, 7 }
 0x287   :  { %1132 = vmatpush.msra.mxu2 %v1059_v57  ;;  %1151 = vmatpush.msra.mxu3 %v1076_v35 }
 0x288   :  { %1111 = vmatpush.msra.mxu1 %v1044_v52  ;;  %1169 = vmatpush.msrb.mxu0 %v1094_v23  ;;  %v1019_v23 = vperm.slane %v1011_v8, 1  ;;  %v1020_v34 = vperm.slane %v1012_v17, 1 }
 0x289   :  { %1133 = vmatpush.msra.mxu2 %v1058_v59  ;;  %1152 = vmatpush.msra.mxu3 %v1075_v38  ;;  %v1018_v59 = vperm.slane %v1010_v50, 1 }
 0x28a   :  { %1112 = vmatpush.msra.mxu1 %v1043_v54  ;;  %1170 = vmatpush.msrb.mxu0 %v1093_v37  ;;  %v1073_v54 = vld [vmem:[%s2049_s4 + $0x120] sm:$0xff] }
 0x28b   :  { %1134 = vmatpush.msra.mxu2 %v1057_v61  ;;  %1153 = vmatpush.msra.mxu3 %v1074_v42  ;;  %v1089_v61 = vld [vmem:[%s2049_s4 + $0x1a0] sm:$0xff] }
 0x28c   :  { %1113 = vmatpush.msra.mxu1 %v1042_v56  ;;  %1171 = vmatpush.msrb.mxu0 %v1092_v40 }
 0x28d   :  { %1135 = vmatpush.msra.mxu2 %v1056_v63  ;;  %1154 = vmatpush.msra.mxu3 %v1073_v54  ;;  %v2232_v54 = vld [vmem:[#allocation16_spill] sm:$0xff] }
 0x28e   :  { %1114 = vmatpush.msra.mxu1 %v1041_v58  ;;  %1172 = vmatpush.msrb.mxu0 %v1091_v43 }
 0x28f   :  { %1136 = vmatpush.msra.mxu2 %v1055_v36  ;;  %v1088_v36 = vld [vmem:[%s2049_s4 + $0x198] sm:$0xff] }
 0x290   :  { %1115 = vmatpush.msra.mxu1 %v1040_v60  ;;  %1173 = vmatpush.msrb.mxu0 %v1090_v55  ;;  %v1072_v60 = vld [vmem:[%s2049_s4 + $0x118] sm:$0xff] }
 0x291   :  { %1137 = vmatpush.msra.mxu2 %v1054_v24  ;;  %1155 = vmatpush.msra.mxu3 %v1072_v60  ;;  %v1070_v24 = vld [vmem:[%s2049_s4 + $0x108] sm:$0xff] }
 0x292   :  { %1116 = vmatpush.msra.mxu1 %v1039_v62  ;;  %1174 = vmatpush.msrb.mxu0 %v1089_v61 }
 0x293   :  { %1138 = vmatpush.msra.mxu2 %v1053_v2  ;;  %v1069_v2 = vld [vmem:[%s2049_s4 + $0x100] sm:$0xff] }
 0x294   :  { %1117 = vmatpush.msra.mxu1 %v1038_v44  ;;  %v1071_v44 = vld [vmem:[%s2049_s4 + $0x110] sm:$0xff]  ;;  %1175 = vmatpush.msrb.mxu0 %v1088_v36 }
 0x295   :  { %1156 = vmatpush.msra.mxu3 %v1071_v44 }
 0x296   :  { %1118 = vmatpush.msra.mxu1 %v1037_v10  ;;  %1176 = vmatpush.msrb.mxu0 %v1087_v20 }
 0x297   :  { %1157 = vmatpush.msra.mxu3 %v1070_v24 }
 0x299   :  { %1158 = vmatpush.msra.mxu3 %v1069_v2 }
 0x2a8   :  { %v685_v27 = vpop.f32.mrf.mxu1 }
 0x2af   :  { %v705_v18 = vpop.f32.mrf.mxu2 }
 0x2b0   :  { %v706_v33 = vadd.f32 %v705_v18, %v685_v27  ;;  %v1086_v18 = vld [vmem:[%s2049_s4 + $0x188] sm:$0xff] }
 0x2b1   :  { %v725_v12 = vpop.f32.mrf.mxu3  ;;  %1177 = vmatpush.msrb.mxu0 %v1086_v18 }
 0x2b3   :  { %1178 = vmatpush.msrb.mxu0 %v1085_v19 }
 0x2b4   :  { %v745_v13 = vpop.f32.mrf.mxu0 }
 0x2b5   :  { %v746_v45 = vadd.f32 %v745_v13, %v725_v12  ;;  %v991_v12 = vperm.slane %v2230_v21, 4 }
 0x2b7   :  { %v999_v1 = vperm.slane %v991_v12, 0 }
 0x2b9   :  { %v1003_v5 = vmul.f32 %v999_v1, %v2231_v4 }
 0x2c4   :  { %v1937_v6 = vpop.f32.mrf.mxu1 }
 0x2ca   :  { %v1951_v11 = vpop.f32.mrf.mxu2 }
 0x2cb   :  { %v1956_v16 = vpop.f32.mrf.mxu3  ;;  %v786_v13 = vadd.f32 %v1951_v11, %v1937_v6 }
 0x2cd   :  { %v845_v31 = vpop.f32.mrf.mxu1 }
 0x2ce   :  { %v1968_v25 = vpop.f32.mrf.mxu0  ;;  %v846_v28 = vadd.f32 %v845_v31, %v706_v33  ;;  %v1004_v33 = vmul.f32 %v1000_v39, %v2231_v4 }
 0x2cf   :  { %v826_v15 = vadd.f32 %v1968_v25, %v1956_v16  ;;  %v1101_v25 = vld [vmem:[%s2050_s5] sm:$0x7] }
 0x2d4   :  { %v865_v46 = vpop.f32.mrf.mxu2 }
 0x2d5   :  { %v866_v47 = vadd.f32 %v865_v46, %v846_v28  ;;  %v885_v49 = vpop.f32.mrf.mxu3 }
 0x2d6   :  { %v886_v51 = vadd.f32 %v885_v49, %v746_v45  ;;  %v1190_v49 = vperm.slane %v1101_v25, 1 }
 0x2d7   :  { %v1005_v52 = vadd.f32 %v1001_v29, %v866_v47  ;;  %v1102_v29 = vperm.slane %v1101_v25, 0 }
 0x2d8   :  { %v905_v56 = vpop.f32.mrf.mxu0 }
 0x2d9   :  { %v1021_v57 = vadd.f32 %v1017_v48, %v1005_v52  ;;  %v906_v58 = vadd.f32 %v905_v56, %v886_v51 }
 0x2db   :  { %v1006_v62 = vadd.f32 %v1002_v53, %v906_v58  ;;  %vm1025_vm6 = vcmp.ge.f32.partialorder %v1021_v57, 0.0  ;;  %v1029_v63 = vmul.f32 0.2, %v1021_v57 }
 0x2dd   :  { %v1022_v27 = vadd.f32 %v1018_v59, %v1006_v62  ;;  %v1033_v10 = vsel %vm1025_vm6, %v1021_v57, %v1029_v63  ;;  %v1195_v57 = vperm.slane %v1101_v25, 2 }
 0x2de   :  { %1119 = vmatmul.f32.vlgmr.msra.gmra.mxu1 %v1033_v10 }
 0x2df   :  { %vm1026_vm7 = vcmp.ge.f32.partialorder %v1022_v27, 0.0  ;;  %v1030_v9 = vmul.f32 0.2, %v1022_v27 }
 0x2e1   :  { %v1034_v32 = vsel %vm1026_vm7, %v1022_v27, %v1030_v9 }
 0x2e2   :  { %1139 = vmatmul.f32.vlgmr.msra.gmra.mxu2 %v1034_v32 }
 0x2f0   :  { %v925_v7 = vpop.f32.mrf.mxu1 }
 0x2f1   :  { %v926_v0 = vadd.f32 %v925_v7, %v786_v13 }
 0x2f6   :  { %v945_v3 = vpop.f32.mrf.mxu2 }
 0x2f7   :  { %v946_v22 = vadd.f32 %v945_v3, %v926_v0  ;;  %v965_v26 = vpop.f32.mrf.mxu3 }
 0x2f8   :  { %v966_v30 = vadd.f32 %v965_v26, %v826_v15  ;;  %v985_v31 = vpop.f32.mrf.mxu0 }
 0x2f9   :  { %v1007_v6 = vadd.f32 %v1003_v5, %v946_v22 }
 0x2fa   :  { %v986_v11 = vadd.f32 %v985_v31, %v966_v30 }
 0x2fb   :  { %v1023_v35 = vadd.f32 %v1019_v23, %v1007_v6 }
 0x2fc   :  { %v1008_v37 = vadd.f32 %v1004_v33, %v986_v11 }
 0x2fd   :  { %vm1027_vm8 = vcmp.ge.f32.partialorder %v1023_v35, 0.0  ;;  %v1031_v38 = vmul.f32 0.2, %v1023_v35 }
 0x2fe   :  { %v1024_v40 = vadd.f32 %v1020_v34, %v1008_v37 }
 0x2ff   :  { %v1035_v28 = vsel %vm1027_vm8, %v1023_v35, %v1031_v38 }
 0x300   :  { %1159 = vmatmul.f32.vlgmr.msra.gmra.mxu3 %v1035_v28  ;;  %vm1028_vm9 = vcmp.ge.f32.partialorder %v1024_v40, 0.0  ;;  %v1032_v16 = vmul.f32 0.2, %v1024_v40 }
 0x302   :  { %v1036_v21 = vsel %vm1028_vm9, %v1024_v40, %v1032_v16 }
 0x303   :  { %1179 = vmatmul.f32.vlgmr.msrb.gmra.mxu0 %v1036_v21 }
 0x35b   :  { %v1120_v4 = vpop.f32.mrf.mxu1 }
 0x35c   :  { %v1121_v42 = vadd.f32 %v1120_v4, %v1102_v29 }
 0x365   :  { %v1140_v41 = vpop.f32.mrf.mxu2 }
 0x366   :  { %v1141_v43 = vadd.f32 %v1140_v41, %v1121_v42 }
 0x380   :  { %v1180_v47 = vpop.f32.mrf.mxu0 }
 0x383   :  { %v1160_v45 = vpop.f32.mrf.mxu3 }
 0x384   :  { %v1161_v46 = vadd.f32 %v1160_v45, %v1141_v43 }
 0x386   :  { %v1181_v48 = vadd.f32 %v1180_v47, %v1161_v46 }
 0x388   :  { %vm1183_vm10 = vcmp.ge.f32.partialorder %v1181_v48, 0.0  ;;  %v1184_v50 = vmul.f32 0.2, %v1181_v48 }
 0x38a   :  { %v1185_v51 = vsel %vm1183_vm10, %v1181_v48, %v1184_v50 }
 0x38b   :  { %v1191_v52 = vmul.f32 %v1190_v49, %v1185_v51  ;;  %v1186_v55 = vmul.f32 %v1185_v51, %v2232_v54 }
 0x38d   :  { %v1192_v53 = vsel %vm370_vm13, %v1191_v52, 0.0  ;;  %v1187_v56 = vsel %vm370_vm13, %v1186_v55, 0.0 }
 0x38e   :  { %1193 = vadd.xlane.f32.xlu0 %v1192_v53 }
 0x396   :  { %1188 = vadd.xlane.f32.xlu0 %v1187_v56 }
 0x401   :  { %v1194_v58 = vpop.xlane.xlu0 %1193 }
 0x402   :  { %v1196_v59 = vadd.f32 %v1195_v57, %v1194_v58 }
 0x404   :  { %v1198_v60 = vmul.f32 0.2, %v1196_v59  ;;  %vm1197_vm11 = vcmp.ge.f32.partialorder %v1196_v59, 0.0 }
 0x406   :  { %v1199_v61 = vsel %vm1197_vm11, %v1196_v59, %v1198_v60 }
 0x409   :  { %v1189_v62 = vpop.xlane.xlu0 %1188 }
 0x40a   :  { %v1200_v63 = vadd.f32 %v1199_v61, %v1189_v62 }
 0x40c   :  { %1202 = vst.msk [vmem:[%s2051_s7] sm:$0xff] %vm1201_vm12, %v1200_v63 }
 0x40d   :  { %1207 = vsyncmov [#allocation3] }
 0x410   :  { %s1208_s15 = vpop.sfrf %1207 }
 0x411   :  { %p1231_p0 = scmp.ne.s32.totalorder %s1208_s15, 0 }
 0x413   :  { %1212 = shalt.err (%p1231_p0)  }
 0x414   :  { %1214 = vsyncmov [#allocation3 + $0x1] }
 0x417   :  { %s1215_s16 = vpop.sfrf %1214 }
 0x418   :  { %p1232_p1 = scmp.ne.s32.totalorder %s1215_s16, 0 }
 0x41a   :  { %1219 = shalt.err (%p1232_p1)  }

</bundles_post_ra>
